<compile_context>
chip_gen: v7x
topology: tpu7x:2x2x1
jax: 0.10.0
libtpu: 0.0.40
codegen_flags: <defaults>
</compile_context>

<pallas_src>
import math
import numpy as np
import jax
import jax.numpy as jnp
from jax import lax  # noqa: F401
from jax.experimental import pallas as pl
from jax.experimental.pallas import tpu as pltpu

# ---------------- model hyper-parameters (small, consistent with the module) ----------------
BATCH = 2
SEQ = 8            # sequence length of x
INPUT_SIZE = 4     # number of index columns
FEAT_DIM = 12      # feature columns (plays the role of seq_len*12 in the reference)
D_IN = INPUT_SIZE + FEAT_DIM          # LSTM input size
HIDDEN = 32
E = 2 * HIDDEN                        # bi-LSTM output dim / attention embed dim
NUM_HEADS = 4                         # must divide E
HEAD_DIM = E // NUM_HEADS
OUT = 8                               # output_size
NUM_EMB = 20
VOCAB = NUM_EMB + 1
EMB_DIM = 8
G8 = 8 * HIDDEN                       # fused gate width (both directions)


# ------------- single fused kernel: embed-pool + biLSTM + MHA(last query) + linear -------------
def fused_forward_kernel(xtm_ref, spread_ref, colv_ref, emb_tab_ref, wih_feat_ref,
                         b_all_ref, rrev_ref, fmask_ref, whh_bd_ref,
                         wqkvT_ref, bqkv_ref, headsum_ref, headexp_ref, psel_ref,
                         wolT_ref, bol_ref,
                         o_ref, lstm_ref):
    T, B, H = SEQ, BATCH, HIDDEN
    TB = T * B

    # xtm: time-major flattened input, row = t*B + b, columns [idx(4) | feats(12)]
    xtm = xtm_ref[...]                                              # (TB, D_IN)
    # .long() truncation, back to f32 (small integer values are exact in f32)
    idx_f = xtm[:, 0:INPUT_SIZE].astype(jnp.int32).astype(jnp.float32)   # (TB, 4)
    feats = xtm[:, INPUT_SIZE:D_IN]                                      # (TB, 12)

    # ---- one-hot over fused (index-column, vocab) axis, built with a constant matmul ----
    # idx_exp[r, j*V+v] = idx[r, j];   onehot[r, j*V+v] = (idx[r, j] == v)
    idx_exp = jnp.dot(idx_f, spread_ref[...], preferred_element_type=jnp.float32)  # (TB, 84)
    onehot = jnp.where(idx_exp == colv_ref[...], 1.0, 0.0)                          # (TB, 84)

    # ---- hoisted LSTM input projection, both directions fused, emb-maxpool folded in ----
    # emb_tab[(j,v), :] = rowmax[v] * WihT[j, :]  (gate columns already permuted)
    xproj = (jnp.dot(onehot, emb_tab_ref[...], preferred_element_type=jnp.float32)
             + jnp.dot(feats, wih_feat_ref[...], preferred_element_type=jnp.float32)
             + b_all_ref[...])                                      # (TB, 8H)

    # per-step gate inputs: fwd columns from time s, bwd columns from time T-1-s
    # (one constant permutation matmul + one masked blend, OFF the serial chain)
    xproj_rev = jnp.dot(rrev_ref[...], xproj, preferred_element_type=jnp.float32)   # (TB, 8H)
    fmask = fmask_ref[...]                                          # (1, 8H): 1.0 on fwd columns
    xstep = xproj_rev + fmask * (xproj - xproj_rev)                 # (TB, 8H)

    whh_bd = whh_bd_ref[...]                                        # (2H, 8H) block-diagonal

    # ---- interleaved fwd/bwd recurrence: fused state [h_f | h_b], [c_f | c_b] ----
    hc = jnp.zeros((B, 2 * H), jnp.float32)
    cc = jnp.zeros((B, 2 * H), jnp.float32)
    for s in range(T):                                              # fully unrolled (static)
        tf = s
        tb = T - 1 - s
        gates = xstep[s * B:(s + 1) * B, :] + jnp.dot(
            hc, whh_bd, preferred_element_type=jnp.float32)         # (B, 8H)
        # column layout: [i_f | i_b | f_f | f_b | o_f | o_b | g_f | g_b]
        sig = jax.nn.sigmoid(gates[:, 0:6 * H])                     # one wide sigmoid
        g = jnp.tanh(gates[:, 6 * H:8 * H])                         # one tanh for cell gates
        cc = sig[:, 2 * H:4 * H] * cc + sig[:, 0:2 * H] * g
        hc = sig[:, 4 * H:6 * H] * jnp.tanh(cc)
        # write hidden states straight into the lstm_out scratch (time-major rows)
        lstm_ref[tf * B:(tf + 1) * B, 0:H] = hc[:, 0:H]             # fwd half at time tf
        lstm_ref[tb * B:(tb + 1) * B, H:2 * H] = hc[:, H:2 * H]     # bwd half at time tb

    x_all = lstm_ref[...]                                           # (TB, E), dropout == identity

    # ---- batched multi-head self-attention (only the last query row per batch is consumed) ----
    # fused QKV projection; q columns/bias pre-scaled by 1/sqrt(head_dim) in init
    qkv = jnp.dot(x_all, wqkvT_ref[...], preferred_element_type=jnp.float32) + bqkv_ref[...]
    q = qkv[(T - 1) * B:T * B, 0:E]                                 # (B, E) queries @ t = T-1
    k = qkv[:, E:2 * E]                                             # (TB, E)
    v = qkv[:, 2 * E:3 * E]                                         # (TB, E)

    # per-head scores for all (b, t): sum over each head's lanes via a constant 0/1 matmul
    prod = jnp.tile(q, (T, 1)) * k                                  # (TB, E)
    scores = jnp.dot(prod, headsum_ref[...], preferred_element_type=jnp.float32)    # (TB, NH)

    # softmax over time per (b, h); shifting by the GLOBAL max is mathematically identical
    m = jnp.max(scores, axis=1, keepdims=True)
    m = jnp.max(m, axis=0, keepdims=True)                           # (1, 1)
    e = jnp.exp(scores - m)                                         # (TB, NH)
    denom = jnp.dot(psel_ref[...], e, preferred_element_type=jnp.float32)            # (B, NH)
    dinv = pl.reciprocal(
        jnp.dot(denom, headexp_ref[...], preferred_element_type=jnp.float32),
        approx=True)                                                # (B, E)

    p_exp = jnp.dot(e, headexp_ref[...], preferred_element_type=jnp.float32)          # (TB, E)
    ctx = jnp.dot(psel_ref[...], p_exp * v, preferred_element_type=jnp.float32) * dinv  # (B, E)

    # out_proj and final linear composed into a single affine map
    o_ref[...] = jnp.dot(ctx, wolT_ref[...], preferred_element_type=jnp.float32) + bol_ref[...]


# ---------------- wrapper ----------------
@jax.jit
def model_forward(x, p):
    B, T, D = x.shape
    # layout plumbing only (time-major flatten of the tiny input); all compute is in the kernel
    xtm = jnp.transpose(x, (1, 0, 2)).reshape(T * B, D)
    inputs = (xtm, p['spread'], p['colv'], p['emb_tab'], p['wih_feat'],
              p['b_all'], p['rrev'], p['fwd_mask'], p['whh_bd'],
              p['wqkvT'], p['bqkv'], p['headsum'], p['headexp'], p['psel'],
              p['wolT'], p['bol'])
    return pl.pallas_call(
        fused_forward_kernel,
        out_shape=jax.ShapeDtypeStruct((B, OUT), jnp.float32),
        in_specs=[pl.BlockSpec(memory_space=pltpu.MemorySpace.VMEM) for _ in inputs],
        out_specs=pl.BlockSpec(memory_space=pltpu.MemorySpace.VMEM),
        scratch_shapes=[pltpu.VMEM((T * B, E), jnp.float32)],       # lstm_out buffer
    )(*inputs)


# ---------------- deterministic parameter init (PyTorch-layout weights, then repacked) ----------------
def init_params(key):
    ks = jax.random.split(key, 16)
    u = lambda k, shape, s=0.1: jax.random.uniform(k, shape, jnp.float32, -s, s)
    H = HIDDEN

    emb = u(ks[0], (VOCAB, EMB_DIM))

    # LSTM (PyTorch layout: W_ih (4H, D_IN), W_hh (4H, H), biases (4H,); gate order i,f,g,o)
    w_ih_f = u(ks[1], (4 * H, D_IN));  w_hh_f = u(ks[2], (4 * H, H))
    b_ih_f = u(ks[3], (4 * H,));       b_hh_f = u(ks[4], (4 * H,))
    w_ih_b = u(ks[5], (4 * H, D_IN));  w_hh_b = u(ks[6], (4 * H, H))
    b_ih_b = u(ks[7], (4 * H,));       b_hh_b = u(ks[8], (4 * H,))

    # MultiheadAttention: in_proj (3E, E) [q|k|v rows], in_proj_bias (3E,), out_proj (E, E), (E,)
    in_proj_w = u(ks[9], (3 * E, E));  in_proj_b = u(ks[10], (3 * E,))
    out_proj_w = u(ks[11], (E, E));    out_proj_b = u(ks[12], (E,))

    # final linear (OUT, E), (OUT,)
    lin_w = u(ks[13], (OUT, E));       lin_b = u(ks[14], (OUT,))

    # ---- gate-column permutation: [i,f,g,o]_f | [i,f,g,o]_b  ->  [i_f,i_b,f_f,f_b,o_f,o_b,g_f,g_b]
    def blk(d, g):
        return np.arange(d * 4 * H + g * H, d * 4 * H + g * H + H)
    perm = np.concatenate([blk(0, 0), blk(1, 0),        # i
                           blk(0, 1), blk(1, 1),        # f
                           blk(0, 3), blk(1, 3),        # o (sigmoid gates first)
                           blk(0, 2), blk(1, 2)])       # g (tanh gates last)

    wihT_all = jnp.concatenate([w_ih_f.T, w_ih_b.T], axis=1)[:, perm]              # (D_IN, 8H)
    b_all = jnp.concatenate([b_ih_f + b_hh_f, b_ih_b + b_hh_b])[perm].reshape(1, G8)

    whh_bd = jnp.zeros((2 * H, G8), jnp.float32)
    whh_bd = whh_bd.at[:H, :4 * H].set(w_hh_f.T).at[H:, 4 * H:].set(w_hh_b.T)
    whh_bd = whh_bd[:, perm]                                                        # (2H, 8H)

    # embedding max-pool folded into the hoisted projection
    rowmax = jnp.max(emb, axis=1)                                                   # (VOCAB,)
    emb_tab = (rowmax[None, :, None] * wihT_all[:INPUT_SIZE, None, :]).reshape(
        INPUT_SIZE * VOCAB, G8)                                                     # (84, 8H)
    wih_feat = wihT_all[INPUT_SIZE:, :]                                             # (12, 8H)

    fwd_mask = np.zeros((1, G8), np.float32)
    for bi in (0, 2, 4, 6):                                                         # fwd blocks
        fwd_mask[0, bi * H:(bi + 1) * H] = 1.0

    # one-hot construction helpers (constant)
    spread = np.kron(np.eye(INPUT_SIZE, dtype=np.float32),
                     np.ones((1, VOCAB), np.float32))                               # (4, 84)
    colv = np.tile(np.arange(VOCAB, dtype=np.float32), INPUT_SIZE).reshape(1, -1)   # (1, 84)

    # time-reversal permutation over time-major rows (row t*B+b -> row (T-1-t)*B+b)
    rrev = np.zeros((SEQ * BATCH, SEQ * BATCH), np.float32)
    for t in range(SEQ):
        for b in range(BATCH):
            rrev[t * BATCH + b, (SEQ - 1 - t) * BATCH + b] = 1.0

    # attention helpers (constant 0/1 matrices)
    headsum = np.kron(np.eye(NUM_HEADS, dtype=np.float32),
                      np.ones((HEAD_DIM, 1), np.float32))                           # (E, NH)
    headexp = np.ascontiguousarray(headsum.T)                                       # (NH, E)
    psel = np.tile(np.eye(BATCH, dtype=np.float32), (1, SEQ))                       # (B, T*B)

    # fused QKV (q weights/bias pre-scaled by 1/sqrt(head_dim))
    scale = 1.0 / math.sqrt(HEAD_DIM)
    wqkvT = jnp.concatenate([in_proj_w[:E].T * scale,
                             in_proj_w[E:2 * E].T,
                             in_proj_w[2 * E:].T], axis=1)                          # (E, 3E)
    bqkv = jnp.concatenate([in_proj_b[:E] * scale,
                            in_proj_b[E:2 * E],
                            in_proj_b[2 * E:]]).reshape(1, 3 * E)

    # out_proj and final linear composed
    wolT = out_proj_w.T @ lin_w.T                                                   # (E, OUT)
    bol = out_proj_b.reshape(1, E) @ lin_w.T + lin_b.reshape(1, OUT)                # (1, OUT)

    return {
        'spread': jnp.asarray(spread), 'colv': jnp.asarray(colv),
        'emb_tab': emb_tab, 'wih_feat': wih_feat, 'b_all': b_all,
        'rrev': jnp.asarray(rrev), 'fwd_mask': jnp.asarray(fwd_mask),
        'whh_bd': whh_bd,
        'wqkvT': wqkvT, 'bqkv': bqkv,
        'headsum': jnp.asarray(headsum), 'headexp': jnp.asarray(headexp),
        'psel': jnp.asarray(psel),
        'wolT': wolT, 'bol': bol,
    }


if __name__ == "__main__":
    key = jax.random.PRNGKey(0)
    k_par, k_idx, k_feat = jax.random.split(key, 3)

    params = init_params(k_par)

    idx_part = jax.random.randint(k_idx, (BATCH, SEQ, INPUT_SIZE), 0, VOCAB).astype(jnp.float32)
    feat_part = jax.random.normal(k_feat, (BATCH, SEQ, FEAT_DIM), jnp.float32)
    x = jnp.concatenate([idx_part, feat_part], axis=-1)     # (B, T, INPUT_SIZE + FEAT_DIM)

    y = model_forward(x, params)
    y = jax.block_until_ready(y)
    assert y.shape == (BATCH, OUT) and y.dtype == jnp.float32
    assert bool(jnp.all(jnp.isfinite(y)))
    print("KERNEL_OK")
</pallas_src>

<mosaic_0001>
module attributes {stable_mosaic.version = 11 : i64} {
  func.func @fused_forward_kernel(%arg0: memref<16x16xf32, #tpu.memory_space<vmem>>, %arg1: memref<4x84xf32, #tpu.memory_space<vmem>>, %arg2: memref<1x84xf32, #tpu.memory_space<vmem>>, %arg3: memref<84x256xf32, #tpu.memory_space<vmem>>, %arg4: memref<12x256xf32, #tpu.memory_space<vmem>>, %arg5: memref<1x256xf32, #tpu.memory_space<vmem>>, %arg6: memref<16x16xf32, #tpu.memory_space<vmem>>, %arg7: memref<1x256xf32, #tpu.memory_space<vmem>>, %arg8: memref<64x256xf32, #tpu.memory_space<vmem>>, %arg9: memref<64x192xf32, #tpu.memory_space<vmem>>, %arg10: memref<1x192xf32, #tpu.memory_space<vmem>>, %arg11: memref<64x4xf32, #tpu.memory_space<vmem>>, %arg12: memref<4x64xf32, #tpu.memory_space<vmem>>, %arg13: memref<2x16xf32, #tpu.memory_space<vmem>>, %arg14: memref<64x8xf32, #tpu.memory_space<vmem>>, %arg15: memref<1x8xf32, #tpu.memory_space<vmem>>, %arg16: memref<2x8xf32, #tpu.memory_space<vmem>>, %arg17: memref<16x64xf32, #tpu.memory_space<vmem>>) attributes {dimension_semantics = [], scalar_prefetch = 0 : i64, scratch_operands = 1 : i64, tpu.core_type = #tpu.core_type<tc>} {
    %c0 = arith.constant 0 : index
    %c0_0 = arith.constant 0 : index
    %0 = vector.load %arg0[%c0, %c0_0] : memref<16x16xf32, #tpu.memory_space<vmem>>, vector<16x16xf32>
    %1 = vector.extract_strided_slice %0 {offsets = [0, 0], sizes = [16, 4], strides = [1, 1]} : vector<16x16xf32> to vector<16x4xf32>
    %2 = arith.fptosi %1 : vector<16x4xf32> to vector<16x4xi32>
    %3 = arith.sitofp %2 : vector<16x4xi32> to vector<16x4xf32>
    %4 = vector.extract_strided_slice %0 {offsets = [0, 4], sizes = [16, 12], strides = [1, 1]} : vector<16x16xf32> to vector<16x12xf32>
    %c0_1 = arith.constant 0 : index
    %c0_2 = arith.constant 0 : index
    %5 = vector.load %arg1[%c0_1, %c0_2] : memref<4x84xf32, #tpu.memory_space<vmem>>, vector<4x84xf32>
    %cst = arith.constant dense<0.000000e+00> : vector<16x84xf32>
    %6 = tpu.matmul %3, %5, %cst {dimension_numbers = #tpu.dot_dimension_numbers<[1], [0], [0], [1], [0, 0, 1, 1], [], []>} : vector<16x4xf32>, vector<4x84xf32>, vector<16x84xf32> -> vector<16x84xf32>
    %c0_3 = arith.constant 0 : index
    %c0_4 = arith.constant 0 : index
    %7 = vector.load %arg2[%c0_3, %c0_4] : memref<1x84xf32, #tpu.memory_space<vmem>>, vector<1x84xf32>
    %8 = vector.broadcast %7 : vector<1x84xf32> to vector<16x84xf32>
    %9 = arith.cmpf oeq, %6, %8 : vector<16x84xf32>
    %cst_5 = arith.constant 1.000000e+00 : f32
    %cst_6 = arith.constant 0.000000e+00 : f32
    %10 = vector.broadcast %cst_5 : f32 to vector<16x84xf32>
    %11 = vector.broadcast %cst_6 : f32 to vector<16x84xf32>
    %12 = arith.select %9, %10, %11 : vector<16x84xi1>, vector<16x84xf32>
    %c0_7 = arith.constant 0 : index
    %c0_8 = arith.constant 0 : index
    %13 = vector.load %arg3[%c0_7, %c0_8] : memref<84x256xf32, #tpu.memory_space<vmem>>, vector<84x256xf32>
    %cst_9 = arith.constant dense<0.000000e+00> : vector<16x256xf32>
    %14 = tpu.matmul %12, %13, %cst_9 {dimension_numbers = #tpu.dot_dimension_numbers<[1], [0], [0], [1], [0, 0, 1, 1], [], []>} : vector<16x84xf32>, vector<84x256xf32>, vector<16x256xf32> -> vector<16x256xf32>
    %c0_10 = arith.constant 0 : index
    %c0_11 = arith.constant 0 : index
    %15 = vector.load %arg4[%c0_10, %c0_11] : memref<12x256xf32, #tpu.memory_space<vmem>>, vector<12x256xf32>
    %cst_12 = arith.constant dense<0.000000e+00> : vector<16x256xf32>
    %16 = tpu.matmul %4, %15, %cst_12 {dimension_numbers = #tpu.dot_dimension_numbers<[1], [0], [0], [1], [0, 0, 1, 1], [], []>} : vector<16x12xf32>, vector<12x256xf32>, vector<16x256xf32> -> vector<16x256xf32>
    %17 = arith.addf %14, %16 : vector<16x256xf32>
    %c0_13 = arith.constant 0 : index
    %c0_14 = arith.constant 0 : index
    %18 = vector.load %arg5[%c0_13, %c0_14] : memref<1x256xf32, #tpu.memory_space<vmem>>, vector<1x256xf32>
    %19 = vector.broadcast %18 : vector<1x256xf32> to vector<16x256xf32>
    %20 = arith.addf %17, %19 : vector<16x256xf32>
    %c0_15 = arith.constant 0 : index
    %c0_16 = arith.constant 0 : index
    %21 = vector.load %arg6[%c0_15, %c0_16] : memref<16x16xf32, #tpu.memory_space<vmem>>, vector<16x16xf32>
    %cst_17 = arith.constant dense<0.000000e+00> : vector<16x256xf32>
    %22 = tpu.matmul %21, %20, %cst_17 {dimension_numbers = #tpu.dot_dimension_numbers<[1], [0], [0], [1], [0, 0, 1, 1], [], []>} : vector<16x16xf32>, vector<16x256xf32>, vector<16x256xf32> -> vector<16x256xf32>
    %c0_18 = arith.constant 0 : index
    %c0_19 = arith.constant 0 : index
    %23 = vector.load %arg7[%c0_18, %c0_19] : memref<1x256xf32, #tpu.memory_space<vmem>>, vector<1x256xf32>
    %24 = arith.subf %20, %22 : vector<16x256xf32>
    %25 = vector.broadcast %23 : vector<1x256xf32> to vector<16x256xf32>
    %26 = arith.mulf %25, %24 : vector<16x256xf32>
    %27 = arith.addf %22, %26 : vector<16x256xf32>
    %c0_20 = arith.constant 0 : index
    %c0_21 = arith.constant 0 : index
    %28 = vector.load %arg8[%c0_20, %c0_21] : memref<64x256xf32, #tpu.memory_space<vmem>>, vector<64x256xf32>
    %cst_22 = arith.constant 0.000000e+00 : f32
    %29 = vector.broadcast %cst_22 : f32 to vector<2x64xf32>
    %cst_23 = arith.constant 0.000000e+00 : f32
    %30 = vector.broadcast %cst_23 : f32 to vector<2x64xf32>
    %31 = vector.extract_strided_slice %27 {offsets = [0, 0], sizes = [2, 256], strides = [1, 1]} : vector<16x256xf32> to vector<2x256xf32>
    %cst_24 = arith.constant dense<0.000000e+00> : vector<2x256xf32>
    %32 = tpu.matmul %29, %28, %cst_24 {dimension_numbers = #tpu.dot_dimension_numbers<[1], [0], [0], [1], [0, 0, 1, 1], [], []>} : vector<2x64xf32>, vector<64x256xf32>, vector<2x256xf32> -> vector<2x256xf32>
    %33 = arith.addf %31, %32 : vector<2x256xf32>
    %34 = vector.extract_strided_slice %33 {offsets = [0, 0], sizes = [2, 192], strides = [1, 1]} : vector<2x256xf32> to vector<2x192xf32>
    %35 = arith.negf %34 : vector<2x192xf32>
    %36 = math.exp %35 : vector<2x192xf32>
    %cst_25 = arith.constant 1.000000e+00 : f32
    %37 = vector.broadcast %cst_25 : f32 to vector<2x192xf32>
    %38 = arith.addf %37, %36 : vector<2x192xf32>
    %39 = arith.divf %37, %38 : vector<2x192xf32>
    %40 = vector.extract_strided_slice %33 {offsets = [0, 192], sizes = [2, 64], strides = [1, 1]} : vector<2x256xf32> to vector<2x64xf32>
    %41 = math.tanh %40 : vector<2x64xf32>
    %42 = vector.extract_strided_slice %39 {offsets = [0, 64], sizes = [2, 64], strides = [1, 1]} : vector<2x192xf32> to vector<2x64xf32>
    %43 = arith.mulf %42, %30 : vector<2x64xf32>
    %44 = vector.extract_strided_slice %39 {offsets = [0, 0], sizes = [2, 64], strides = [1, 1]} : vector<2x192xf32> to vector<2x64xf32>
    %45 = arith.mulf %44, %41 : vector<2x64xf32>
    %46 = arith.addf %43, %45 : vector<2x64xf32>
    %47 = vector.extract_strided_slice %39 {offsets = [0, 128], sizes = [2, 64], strides = [1, 1]} : vector<2x192xf32> to vector<2x64xf32>
    %48 = math.tanh %46 : vector<2x64xf32>
    %49 = arith.mulf %47, %48 : vector<2x64xf32>
    %50 = vector.extract_strided_slice %49 {offsets = [0, 0], sizes = [2, 32], strides = [1, 1]} : vector<2x64xf32> to vector<2x32xf32>
    %c0_26 = arith.constant 0 : index
    %c0_27 = arith.constant 0 : index
    %51 = vector.load %arg17[%c0_26, %c0_27] : memref<16x64xf32, #tpu.memory_space<vmem>>, vector<2x32xf32>
    tpu.vector_store %arg17[%c0_26, %c0_27], %50 {strides = array<i32>} : memref<16x64xf32, #tpu.memory_space<vmem>>, vector<2x32xf32>,
    %52 = vector.extract_strided_slice %49 {offsets = [0, 32], sizes = [2, 32], strides = [1, 1]} : vector<2x64xf32> to vector<2x32xf32>
    %c14 = arith.constant 14 : index
    %c32 = arith.constant 32 : index
    %53 = vector.load %arg17[%c14, %c32] : memref<16x64xf32, #tpu.memory_space<vmem>>, vector<2x32xf32>
    tpu.vector_store %arg17[%c14, %c32], %52 {strides = array<i32>} : memref<16x64xf32, #tpu.memory_space<vmem>>, vector<2x32xf32>,
    %54 = vector.extract_strided_slice %27 {offsets = [2, 0], sizes = [2, 256], strides = [1, 1]} : vector<16x256xf32> to vector<2x256xf32>
    %cst_28 = arith.constant dense<0.000000e+00> : vector<2x256xf32>
    %55 = tpu.matmul %49, %28, %cst_28 {dimension_numbers = #tpu.dot_dimension_numbers<[1], [0], [0], [1], [0, 0, 1, 1], [], []>} : vector<2x64xf32>, vector<64x256xf32>, vector<2x256xf32> -> vector<2x256xf32>
    %56 = arith.addf %54, %55 : vector<2x256xf32>
    %57 = vector.extract_strided_slice %56 {offsets = [0, 0], sizes = [2, 192], strides = [1, 1]} : vector<2x256xf32> to vector<2x192xf32>
    %58 = arith.negf %57 : vector<2x192xf32>
    %59 = math.exp %58 : vector<2x192xf32>
    %cst_29 = arith.constant 1.000000e+00 : f32
    %60 = vector.broadcast %cst_29 : f32 to vector<2x192xf32>
    %61 = arith.addf %60, %59 : vector<2x192xf32>
    %62 = arith.divf %60, %61 : vector<2x192xf32>
    %63 = vector.extract_strided_slice %56 {offsets = [0, 192], sizes = [2, 64], strides = [1, 1]} : vector<2x256xf32> to vector<2x64xf32>
    %64 = math.tanh %63 : vector<2x64xf32>
    %65 = vector.extract_strided_slice %62 {offsets = [0, 64], sizes = [2, 64], strides = [1, 1]} : vector<2x192xf32> to vector<2x64xf32>
    %66 = arith.mulf %65, %46 : vector<2x64xf32>
    %67 = vector.extract_strided_slice %62 {offsets = [0, 0], sizes = [2, 64], strides = [1, 1]} : vector<2x192xf32> to vector<2x64xf32>
    %68 = arith.mulf %67, %64 : vector<2x64xf32>
    %69 = arith.addf %66, %68 : vector<2x64xf32>
    %70 = vector.extract_strided_slice %62 {offsets = [0, 128], sizes = [2, 64], strides = [1, 1]} : vector<2x192xf32> to vector<2x64xf32>
    %71 = math.tanh %69 : vector<2x64xf32>
    %72 = arith.mulf %70, %71 : vector<2x64xf32>
    %73 = vector.extract_strided_slice %72 {offsets = [0, 0], sizes = [2, 32], strides = [1, 1]} : vector<2x64xf32> to vector<2x32xf32>
    %c2 = arith.constant 2 : index
    %c0_30 = arith.constant 0 : index
    %74 = vector.load %arg17[%c2, %c0_30] : memref<16x64xf32, #tpu.memory_space<vmem>>, vector<2x32xf32>
    tpu.vector_store %arg17[%c2, %c0_30], %73 {strides = array<i32>} : memref<16x64xf32, #tpu.memory_space<vmem>>, vector<2x32xf32>,
    %75 = vector.extract_strided_slice %72 {offsets = [0, 32], sizes = [2, 32], strides = [1, 1]} : vector<2x64xf32> to vector<2x32xf32>
    %c12 = arith.constant 12 : index
    %c32_31 = arith.constant 32 : index
    %76 = vector.load %arg17[%c12, %c32_31] : memref<16x64xf32, #tpu.memory_space<vmem>>, vector<2x32xf32>
    tpu.vector_store %arg17[%c12, %c32_31], %75 {strides = array<i32>} : memref<16x64xf32, #tpu.memory_space<vmem>>, vector<2x32xf32>,
    %77 = vector.extract_strided_slice %27 {offsets = [4, 0], sizes = [2, 256], strides = [1, 1]} : vector<16x256xf32> to vector<2x256xf32>
    %cst_32 = arith.constant dense<0.000000e+00> : vector<2x256xf32>
    %78 = tpu.matmul %72, %28, %cst_32 {dimension_numbers = #tpu.dot_dimension_numbers<[1], [0], [0], [1], [0, 0, 1, 1], [], []>} : vector<2x64xf32>, vector<64x256xf32>, vector<2x256xf32> -> vector<2x256xf32>
    %79 = arith.addf %77, %78 : vector<2x256xf32>
    %80 = vector.extract_strided_slice %79 {offsets = [0, 0], sizes = [2, 192], strides = [1, 1]} : vector<2x256xf32> to vector<2x192xf32>
    %81 = arith.negf %80 : vector<2x192xf32>
    %82 = math.exp %81 : vector<2x192xf32>
    %cst_33 = arith.constant 1.000000e+00 : f32
    %83 = vector.broadcast %cst_33 : f32 to vector<2x192xf32>
    %84 = arith.addf %83, %82 : vector<2x192xf32>
    %85 = arith.divf %83, %84 : vector<2x192xf32>
    %86 = vector.extract_strided_slice %79 {offsets = [0, 192], sizes = [2, 64], strides = [1, 1]} : vector<2x256xf32> to vector<2x64xf32>
    %87 = math.tanh %86 : vector<2x64xf32>
    %88 = vector.extract_strided_slice %85 {offsets = [0, 64], sizes = [2, 64], strides = [1, 1]} : vector<2x192xf32> to vector<2x64xf32>
    %89 = arith.mulf %88, %69 : vector<2x64xf32>
    %90 = vector.extract_strided_slice %85 {offsets = [0, 0], sizes = [2, 64], strides = [1, 1]} : vector<2x192xf32> to vector<2x64xf32>
    %91 = arith.mulf %90, %87 : vector<2x64xf32>
    %92 = arith.addf %89, %91 : vector<2x64xf32>
    %93 = vector.extract_strided_slice %85 {offsets = [0, 128], sizes = [2, 64], strides = [1, 1]} : vector<2x192xf32> to vector<2x64xf32>
    %94 = math.tanh %92 : vector<2x64xf32>
    %95 = arith.mulf %93, %94 : vector<2x64xf32>
    %96 = vector.extract_strided_slice %95 {offsets = [0, 0], sizes = [2, 32], strides = [1, 1]} : vector<2x64xf32> to vector<2x32xf32>
    %c4 = arith.constant 4 : index
    %c0_34 = arith.constant 0 : index
    %97 = vector.load %arg17[%c4, %c0_34] : memref<16x64xf32, #tpu.memory_space<vmem>>, vector<2x32xf32>
    tpu.vector_store %arg17[%c4, %c0_34], %96 {strides = array<i32>} : memref<16x64xf32, #tpu.memory_space<vmem>>, vector<2x32xf32>,
    %98 = vector.extract_strided_slice %95 {offsets = [0, 32], sizes = [2, 32], strides = [1, 1]} : vector<2x64xf32> to vector<2x32xf32>
    %c10 = arith.constant 10 : index
    %c32_35 = arith.constant 32 : index
    %99 = vector.load %arg17[%c10, %c32_35] : memref<16x64xf32, #tpu.memory_space<vmem>>, vector<2x32xf32>
    tpu.vector_store %arg17[%c10, %c32_35], %98 {strides = array<i32>} : memref<16x64xf32, #tpu.memory_space<vmem>>, vector<2x32xf32>,
    %100 = vector.extract_strided_slice %27 {offsets = [6, 0], sizes = [2, 256], strides = [1, 1]} : vector<16x256xf32> to vector<2x256xf32>
    %cst_36 = arith.constant dense<0.000000e+00> : vector<2x256xf32>
    %101 = tpu.matmul %95, %28, %cst_36 {dimension_numbers = #tpu.dot_dimension_numbers<[1], [0], [0], [1], [0, 0, 1, 1], [], []>} : vector<2x64xf32>, vector<64x256xf32>, vector<2x256xf32> -> vector<2x256xf32>
    %102 = arith.addf %100, %101 : vector<2x256xf32>
    %103 = vector.extract_strided_slice %102 {offsets = [0, 0], sizes = [2, 192], strides = [1, 1]} : vector<2x256xf32> to vector<2x192xf32>
    %104 = arith.negf %103 : vector<2x192xf32>
    %105 = math.exp %104 : vector<2x192xf32>
    %cst_37 = arith.constant 1.000000e+00 : f32
    %106 = vector.broadcast %cst_37 : f32 to vector<2x192xf32>
    %107 = arith.addf %106, %105 : vector<2x192xf32>
    %108 = arith.divf %106, %107 : vector<2x192xf32>
    %109 = vector.extract_strided_slice %102 {offsets = [0, 192], sizes = [2, 64], strides = [1, 1]} : vector<2x256xf32> to vector<2x64xf32>
    %110 = math.tanh %109 : vector<2x64xf32>
    %111 = vector.extract_strided_slice %108 {offsets = [0, 64], sizes = [2, 64], strides = [1, 1]} : vector<2x192xf32> to vector<2x64xf32>
    %112 = arith.mulf %111, %92 : vector<2x64xf32>
    %113 = vector.extract_strided_slice %108 {offsets = [0, 0], sizes = [2, 64], strides = [1, 1]} : vector<2x192xf32> to vector<2x64xf32>
    %114 = arith.mulf %113, %110 : vector<2x64xf32>
    %115 = arith.addf %112, %114 : vector<2x64xf32>
    %116 = vector.extract_strided_slice %108 {offsets = [0, 128], sizes = [2, 64], strides = [1, 1]} : vector<2x192xf32> to vector<2x64xf32>
    %117 = math.tanh %115 : vector<2x64xf32>
    %118 = arith.mulf %116, %117 : vector<2x64xf32>
    %119 = vector.extract_strided_slice %118 {offsets = [0, 0], sizes = [2, 32], strides = [1, 1]} : vector<2x64xf32> to vector<2x32xf32>
    %c6 = arith.constant 6 : index
    %c0_38 = arith.constant 0 : index
    %120 = vector.load %arg17[%c6, %c0_38] : memref<16x64xf32, #tpu.memory_space<vmem>>, vector<2x32xf32>
    tpu.vector_store %arg17[%c6, %c0_38], %119 {strides = array<i32>} : memref<16x64xf32, #tpu.memory_space<vmem>>, vector<2x32xf32>,
    %121 = vector.extract_strided_slice %118 {offsets = [0, 32], sizes = [2, 32], strides = [1, 1]} : vector<2x64xf32> to vector<2x32xf32>
    %c8 = arith.constant 8 : index
    %c32_39 = arith.constant 32 : index
    %122 = vector.load %arg17[%c8, %c32_39] : memref<16x64xf32, #tpu.memory_space<vmem>>, vector<2x32xf32>
    tpu.vector_store %arg17[%c8, %c32_39], %121 {strides = array<i32>} : memref<16x64xf32, #tpu.memory_space<vmem>>, vector<2x32xf32>,
    %123 = vector.extract_strided_slice %27 {offsets = [8, 0], sizes = [2, 256], strides = [1, 1]} : vector<16x256xf32> to vector<2x256xf32>
    %cst_40 = arith.constant dense<0.000000e+00> : vector<2x256xf32>
    %124 = tpu.matmul %118, %28, %cst_40 {dimension_numbers = #tpu.dot_dimension_numbers<[1], [0], [0], [1], [0, 0, 1, 1], [], []>} : vector<2x64xf32>, vector<64x256xf32>, vector<2x256xf32> -> vector<2x256xf32>
    %125 = arith.addf %123, %124 : vector<2x256xf32>
    %126 = vector.extract_strided_slice %125 {offsets = [0, 0], sizes = [2, 192], strides = [1, 1]} : vector<2x256xf32> to vector<2x192xf32>
    %127 = arith.negf %126 : vector<2x192xf32>
    %128 = math.exp %127 : vector<2x192xf32>
    %cst_41 = arith.constant 1.000000e+00 : f32
    %129 = vector.broadcast %cst_41 : f32 to vector<2x192xf32>
    %130 = arith.addf %129, %128 : vector<2x192xf32>
    %131 = arith.divf %129, %130 : vector<2x192xf32>
    %132 = vector.extract_strided_slice %125 {offsets = [0, 192], sizes = [2, 64], strides = [1, 1]} : vector<2x256xf32> to vector<2x64xf32>
    %133 = math.tanh %132 : vector<2x64xf32>
    %134 = vector.extract_strided_slice %131 {offsets = [0, 64], sizes = [2, 64], strides = [1, 1]} : vector<2x192xf32> to vector<2x64xf32>
    %135 = arith.mulf %134, %115 : vector<2x64xf32>
    %136 = vector.extract_strided_slice %131 {offsets = [0, 0], sizes = [2, 64], strides = [1, 1]} : vector<2x192xf32> to vector<2x64xf32>
    %137 = arith.mulf %136, %133 : vector<2x64xf32>
    %138 = arith.addf %135, %137 : vector<2x64xf32>
    %139 = vector.extract_strided_slice %131 {offsets = [0, 128], sizes = [2, 64], strides = [1, 1]} : vector<2x192xf32> to vector<2x64xf32>
    %140 = math.tanh %138 : vector<2x64xf32>
    %141 = arith.mulf %139, %140 : vector<2x64xf32>
    %142 = vector.extract_strided_slice %141 {offsets = [0, 0], sizes = [2, 32], strides = [1, 1]} : vector<2x64xf32> to vector<2x32xf32>
    %c8_42 = arith.constant 8 : index
    %c0_43 = arith.constant 0 : index
    %143 = vector.load %arg17[%c8_42, %c0_43] : memref<16x64xf32, #tpu.memory_space<vmem>>, vector<2x32xf32>
    tpu.vector_store %arg17[%c8_42, %c0_43], %142 {strides = array<i32>} : memref<16x64xf32, #tpu.memory_space<vmem>>, vector<2x32xf32>,
    %144 = vector.extract_strided_slice %141 {offsets = [0, 32], sizes = [2, 32], strides = [1, 1]} : vector<2x64xf32> to vector<2x32xf32>
    %c6_44 = arith.constant 6 : index
    %c32_45 = arith.constant 32 : index
    %145 = vector.load %arg17[%c6_44, %c32_45] : memref<16x64xf32, #tpu.memory_space<vmem>>, vector<2x32xf32>
    tpu.vector_store %arg17[%c6_44, %c32_45], %144 {strides = array<i32>} : memref<16x64xf32, #tpu.memory_space<vmem>>, vector<2x32xf32>,
    %146 = vector.extract_strided_slice %27 {offsets = [10, 0], sizes = [2, 256], strides = [1, 1]} : vector<16x256xf32> to vector<2x256xf32>
    %cst_46 = arith.constant dense<0.000000e+00> : vector<2x256xf32>
    %147 = tpu.matmul %141, %28, %cst_46 {dimension_numbers = #tpu.dot_dimension_numbers<[1], [0], [0], [1], [0, 0, 1, 1], [], []>} : vector<2x64xf32>, vector<64x256xf32>, vector<2x256xf32> -> vector<2x256xf32>
    %148 = arith.addf %146, %147 : vector<2x256xf32>
    %149 = vector.extract_strided_slice %148 {offsets = [0, 0], sizes = [2, 192], strides = [1, 1]} : vector<2x256xf32> to vector<2x192xf32>
    %150 = arith.negf %149 : vector<2x192xf32>
    %151 = math.exp %150 : vector<2x192xf32>
    %cst_47 = arith.constant 1.000000e+00 : f32
    %152 = vector.broadcast %cst_47 : f32 to vector<2x192xf32>
    %153 = arith.addf %152, %151 : vector<2x192xf32>
    %154 = arith.divf %152, %153 : vector<2x192xf32>
    %155 = vector.extract_strided_slice %148 {offsets = [0, 192], sizes = [2, 64], strides = [1, 1]} : vector<2x256xf32> to vector<2x64xf32>
    %156 = math.tanh %155 : vector<2x64xf32>
    %157 = vector.extract_strided_slice %154 {offsets = [0, 64], sizes = [2, 64], strides = [1, 1]} : vector<2x192xf32> to vector<2x64xf32>
    %158 = arith.mulf %157, %138 : vector<2x64xf32>
    %159 = vector.extract_strided_slice %154 {offsets = [0, 0], sizes = [2, 64], strides = [1, 1]} : vector<2x192xf32> to vector<2x64xf32>
    %160 = arith.mulf %159, %156 : vector<2x64xf32>
    %161 = arith.addf %158, %160 : vector<2x64xf32>
    %162 = vector.extract_strided_slice %154 {offsets = [0, 128], sizes = [2, 64], strides = [1, 1]} : vector<2x192xf32> to vector<2x64xf32>
    %163 = math.tanh %161 : vector<2x64xf32>
    %164 = arith.mulf %162, %163 : vector<2x64xf32>
    %165 = vector.extract_strided_slice %164 {offsets = [0, 0], sizes = [2, 32], strides = [1, 1]} : vector<2x64xf32> to vector<2x32xf32>
    %c10_48 = arith.constant 10 : index
    %c0_49 = arith.constant 0 : index
    %166 = vector.load %arg17[%c10_48, %c0_49] : memref<16x64xf32, #tpu.memory_space<vmem>>, vector<2x32xf32>
    tpu.vector_store %arg17[%c10_48, %c0_49], %165 {strides = array<i32>} : memref<16x64xf32, #tpu.memory_space<vmem>>, vector<2x32xf32>,
    %167 = vector.extract_strided_slice %164 {offsets = [0, 32], sizes = [2, 32], strides = [1, 1]} : vector<2x64xf32> to vector<2x32xf32>
    %c4_50 = arith.constant 4 : index
    %c32_51 = arith.constant 32 : index
    %168 = vector.load %arg17[%c4_50, %c32_51] : memref<16x64xf32, #tpu.memory_space<vmem>>, vector<2x32xf32>
    tpu.vector_store %arg17[%c4_50, %c32_51], %167 {strides = array<i32>} : memref<16x64xf32, #tpu.memory_space<vmem>>, vector<2x32xf32>,
    %169 = vector.extract_strided_slice %27 {offsets = [12, 0], sizes = [2, 256], strides = [1, 1]} : vector<16x256xf32> to vector<2x256xf32>
    %cst_52 = arith.constant dense<0.000000e+00> : vector<2x256xf32>
    %170 = tpu.matmul %164, %28, %cst_52 {dimension_numbers = #tpu.dot_dimension_numbers<[1], [0], [0], [1], [0, 0, 1, 1], [], []>} : vector<2x64xf32>, vector<64x256xf32>, vector<2x256xf32> -> vector<2x256xf32>
    %171 = arith.addf %169, %170 : vector<2x256xf32>
    %172 = vector.extract_strided_slice %171 {offsets = [0, 0], sizes = [2, 192], strides = [1, 1]} : vector<2x256xf32> to vector<2x192xf32>
    %173 = arith.negf %172 : vector<2x192xf32>
    %174 = math.exp %173 : vector<2x192xf32>
    %cst_53 = arith.constant 1.000000e+00 : f32
    %175 = vector.broadcast %cst_53 : f32 to vector<2x192xf32>
    %176 = arith.addf %175, %174 : vector<2x192xf32>
    %177 = arith.divf %175, %176 : vector<2x192xf32>
    %178 = vector.extract_strided_slice %171 {offsets = [0, 192], sizes = [2, 64], strides = [1, 1]} : vector<2x256xf32> to vector<2x64xf32>
    %179 = math.tanh %178 : vector<2x64xf32>
    %180 = vector.extract_strided_slice %177 {offsets = [0, 64], sizes = [2, 64], strides = [1, 1]} : vector<2x192xf32> to vector<2x64xf32>
    %181 = arith.mulf %180, %161 : vector<2x64xf32>
    %182 = vector.extract_strided_slice %177 {offsets = [0, 0], sizes = [2, 64], strides = [1, 1]} : vector<2x192xf32> to vector<2x64xf32>
    %183 = arith.mulf %182, %179 : vector<2x64xf32>
    %184 = arith.addf %181, %183 : vector<2x64xf32>
    %185 = vector.extract_strided_slice %177 {offsets = [0, 128], sizes = [2, 64], strides = [1, 1]} : vector<2x192xf32> to vector<2x64xf32>
    %186 = math.tanh %184 : vector<2x64xf32>
    %187 = arith.mulf %185, %186 : vector<2x64xf32>
    %188 = vector.extract_strided_slice %187 {offsets = [0, 0], sizes = [2, 32], strides = [1, 1]} : vector<2x64xf32> to vector<2x32xf32>
    %c12_54 = arith.constant 12 : index
    %c0_55 = arith.constant 0 : index
    %189 = vector.load %arg17[%c12_54, %c0_55] : memref<16x64xf32, #tpu.memory_space<vmem>>, vector<2x32xf32>
    tpu.vector_store %arg17[%c12_54, %c0_55], %188 {strides = array<i32>} : memref<16x64xf32, #tpu.memory_space<vmem>>, vector<2x32xf32>,
    %190 = vector.extract_strided_slice %187 {offsets = [0, 32], sizes = [2, 32], strides = [1, 1]} : vector<2x64xf32> to vector<2x32xf32>
    %c2_56 = arith.constant 2 : index
    %c32_57 = arith.constant 32 : index
    %191 = vector.load %arg17[%c2_56, %c32_57] : memref<16x64xf32, #tpu.memory_space<vmem>>, vector<2x32xf32>
    tpu.vector_store %arg17[%c2_56, %c32_57], %190 {strides = array<i32>} : memref<16x64xf32, #tpu.memory_space<vmem>>, vector<2x32xf32>,
    %192 = vector.extract_strided_slice %27 {offsets = [14, 0], sizes = [2, 256], strides = [1, 1]} : vector<16x256xf32> to vector<2x256xf32>
    %cst_58 = arith.constant dense<0.000000e+00> : vector<2x256xf32>
    %193 = tpu.matmul %187, %28, %cst_58 {dimension_numbers = #tpu.dot_dimension_numbers<[1], [0], [0], [1], [0, 0, 1, 1], [], []>} : vector<2x64xf32>, vector<64x256xf32>, vector<2x256xf32> -> vector<2x256xf32>
    %194 = arith.addf %192, %193 : vector<2x256xf32>
    %195 = vector.extract_strided_slice %194 {offsets = [0, 0], sizes = [2, 192], strides = [1, 1]} : vector<2x256xf32> to vector<2x192xf32>
    %196 = arith.negf %195 : vector<2x192xf32>
    %197 = math.exp %196 : vector<2x192xf32>
    %cst_59 = arith.constant 1.000000e+00 : f32
    %198 = vector.broadcast %cst_59 : f32 to vector<2x192xf32>
    %199 = arith.addf %198, %197 : vector<2x192xf32>
    %200 = arith.divf %198, %199 : vector<2x192xf32>
    %201 = vector.extract_strided_slice %194 {offsets = [0, 192], sizes = [2, 64], strides = [1, 1]} : vector<2x256xf32> to vector<2x64xf32>
    %202 = math.tanh %201 : vector<2x64xf32>
    %203 = vector.extract_strided_slice %200 {offsets = [0, 64], sizes = [2, 64], strides = [1, 1]} : vector<2x192xf32> to vector<2x64xf32>
    %204 = arith.mulf %203, %184 : vector<2x64xf32>
    %205 = vector.extract_strided_slice %200 {offsets = [0, 0], sizes = [2, 64], strides = [1, 1]} : vector<2x192xf32> to vector<2x64xf32>
    %206 = arith.mulf %205, %202 : vector<2x64xf32>
    %207 = arith.addf %204, %206 : vector<2x64xf32>
    %208 = vector.extract_strided_slice %200 {offsets = [0, 128], sizes = [2, 64], strides = [1, 1]} : vector<2x192xf32> to vector<2x64xf32>
    %209 = math.tanh %207 : vector<2x64xf32>
    %210 = arith.mulf %208, %209 : vector<2x64xf32>
    %211 = vector.extract_strided_slice %210 {offsets = [0, 0], sizes = [2, 32], strides = [1, 1]} : vector<2x64xf32> to vector<2x32xf32>
    %c14_60 = arith.constant 14 : index
    %c0_61 = arith.constant 0 : index
    %212 = vector.load %arg17[%c14_60, %c0_61] : memref<16x64xf32, #tpu.memory_space<vmem>>, vector<2x32xf32>
    tpu.vector_store %arg17[%c14_60, %c0_61], %211 {strides = array<i32>} : memref<16x64xf32, #tpu.memory_space<vmem>>, vector<2x32xf32>,
    %213 = vector.extract_strided_slice %210 {offsets = [0, 32], sizes = [2, 32], strides = [1, 1]} : vector<2x64xf32> to vector<2x32xf32>
    %c0_62 = arith.constant 0 : index
    %c32_63 = arith.constant 32 : index
    %214 = vector.load %arg17[%c0_62, %c32_63] : memref<16x64xf32, #tpu.memory_space<vmem>>, vector<2x32xf32>
    tpu.vector_store %arg17[%c0_62, %c32_63], %213 {strides = array<i32>} : memref<16x64xf32, #tpu.memory_space<vmem>>, vector<2x32xf32>,
    %c0_64 = arith.constant 0 : index
    %c0_65 = arith.constant 0 : index
    %215 = vector.load %arg17[%c0_64, %c0_65] : memref<16x64xf32, #tpu.memory_space<vmem>>, vector<16x64xf32>
    %c0_66 = arith.constant 0 : index
    %c0_67 = arith.constant 0 : index
    %216 = vector.load %arg9[%c0_66, %c0_67] : memref<64x192xf32, #tpu.memory_space<vmem>>, vector<64x192xf32>
    %cst_68 = arith.constant dense<0.000000e+00> : vector<16x192xf32>
    %217 = tpu.matmul %215, %216, %cst_68 {dimension_numbers = #tpu.dot_dimension_numbers<[1], [0], [0], [1], [0, 0, 1, 1], [], []>} : vector<16x64xf32>, vector<64x192xf32>, vector<16x192xf32> -> vector<16x192xf32>
    %c0_69 = arith.constant 0 : index
    %c0_70 = arith.constant 0 : index
    %218 = vector.load %arg10[%c0_69, %c0_70] : memref<1x192xf32, #tpu.memory_space<vmem>>, vector<1x192xf32>
    %219 = vector.broadcast %218 : vector<1x192xf32> to vector<16x192xf32>
    %220 = arith.addf %217, %219 : vector<16x192xf32>
    %221 = vector.extract_strided_slice %220 {offsets = [14, 0], sizes = [2, 64], strides = [1, 1]} : vector<16x192xf32> to vector<2x64xf32>
    %222 = vector.extract_strided_slice %220 {offsets = [0, 64], sizes = [16, 64], strides = [1, 1]} : vector<16x192xf32> to vector<16x64xf32>
    %223 = vector.extract_strided_slice %220 {offsets = [0, 128], sizes = [16, 64], strides = [1, 1]} : vector<16x192xf32> to vector<16x64xf32>
    %224 = tpu.concatenate %221, %221, %221, %221, %221, %221, %221, %221 in 0 : vector<2x64xf32>, vector<2x64xf32>, vector<2x64xf32>, vector<2x64xf32>, vector<2x64xf32>, vector<2x64xf32>, vector<2x64xf32>, vector<2x64xf32> -> vector<16x64xf32>
    %225 = arith.mulf %224, %222 : vector<16x64xf32>
    %c0_71 = arith.constant 0 : index
    %c0_72 = arith.constant 0 : index
    %226 = vector.load %arg11[%c0_71, %c0_72] : memref<64x4xf32, #tpu.memory_space<vmem>>, vector<64x4xf32>
    %cst_73 = arith.constant dense<0.000000e+00> : vector<16x4xf32>
    %227 = tpu.matmul %225, %226, %cst_73 {dimension_numbers = #tpu.dot_dimension_numbers<[1], [0], [0], [1], [0, 0, 1, 1], [], []>} : vector<16x64xf32>, vector<64x4xf32>, vector<16x4xf32> -> vector<16x4xf32>
    %cst_74 = arith.constant dense<0xFF800000> : vector<16xf32>
    %228 = vector.multi_reduction <maximumf>, %227, %cst_74 [1] : vector<16x4xf32> to vector<16xf32>
    %229 = vector.shape_cast %228 : vector<16xf32> to vector<16x1xf32>
    %cst_75 = arith.constant dense<0xFF800000> : vector<1xf32>
    %230 = vector.multi_reduction <maximumf>, %229, %cst_75 [0] : vector<16x1xf32> to vector<1xf32>
    %231 = vector.shape_cast %230 : vector<1xf32> to vector<1x1xf32>
    %232 = vector.broadcast %231 : vector<1x1xf32> to vector<16x4xf32>
    %233 = arith.subf %227, %232 : vector<16x4xf32>
    %234 = math.exp %233 : vector<16x4xf32>
    %c0_76 = arith.constant 0 : index
    %c0_77 = arith.constant 0 : index
    %235 = vector.load %arg13[%c0_76, %c0_77] : memref<2x16xf32, #tpu.memory_space<vmem>>, vector<2x16xf32>
    %cst_78 = arith.constant dense<0.000000e+00> : vector<2x4xf32>
    %236 = tpu.matmul %235, %234, %cst_78 {dimension_numbers = #tpu.dot_dimension_numbers<[1], [0], [0], [1], [0, 0, 1, 1], [], []>} : vector<2x16xf32>, vector<16x4xf32>, vector<2x4xf32> -> vector<2x4xf32>
    %c0_79 = arith.constant 0 : index
    %c0_80 = arith.constant 0 : index
    %237 = vector.load %arg12[%c0_79, %c0_80] : memref<4x64xf32, #tpu.memory_space<vmem>>, vector<4x64xf32>
    %cst_81 = arith.constant dense<0.000000e+00> : vector<2x64xf32>
    %238 = tpu.matmul %236, %237, %cst_81 {dimension_numbers = #tpu.dot_dimension_numbers<[1], [0], [0], [1], [0, 0, 1, 1], [], []>} : vector<2x4xf32>, vector<4x64xf32>, vector<2x64xf32> -> vector<2x64xf32>
    %239 = tpu.reciprocal %238 {approx = true} : vector<2x64xf32> -> vector<2x64xf32>
    %c0_82 = arith.constant 0 : index
    %c0_83 = arith.constant 0 : index
    %240 = vector.load %arg12[%c0_82, %c0_83] : memref<4x64xf32, #tpu.memory_space<vmem>>, vector<4x64xf32>
    %cst_84 = arith.constant dense<0.000000e+00> : vector<16x64xf32>
    %241 = tpu.matmul %234, %240, %cst_84 {dimension_numbers = #tpu.dot_dimension_numbers<[1], [0], [0], [1], [0, 0, 1, 1], [], []>} : vector<16x4xf32>, vector<4x64xf32>, vector<16x64xf32> -> vector<16x64xf32>
    %c0_85 = arith.constant 0 : index
    %c0_86 = arith.constant 0 : index
    %242 = vector.load %arg13[%c0_85, %c0_86] : memref<2x16xf32, #tpu.memory_space<vmem>>, vector<2x16xf32>
    %243 = arith.mulf %241, %223 : vector<16x64xf32>
    %cst_87 = arith.constant dense<0.000000e+00> : vector<2x64xf32>
    %244 = tpu.matmul %242, %243, %cst_87 {dimension_numbers = #tpu.dot_dimension_numbers<[1], [0], [0], [1], [0, 0, 1, 1], [], []>} : vector<2x16xf32>, vector<16x64xf32>, vector<2x64xf32> -> vector<2x64xf32>
    %245 = arith.mulf %244, %239 : vector<2x64xf32>
    %c0_88 = arith.constant 0 : index
    %c0_89 = arith.constant 0 : index
    %246 = vector.load %arg14[%c0_88, %c0_89] : memref<64x8xf32, #tpu.memory_space<vmem>>, vector<64x8xf32>
    %cst_90 = arith.constant dense<0.000000e+00> : vector<2x8xf32>
    %247 = tpu.matmul %245, %246, %cst_90 {dimension_numbers = #tpu.dot_dimension_numbers<[1], [0], [0], [1], [0, 0, 1, 1], [], []>} : vector<2x64xf32>, vector<64x8xf32>, vector<2x8xf32> -> vector<2x8xf32>
    %c0_91 = arith.constant 0 : index
    %c0_92 = arith.constant 0 : index
    %248 = vector.load %arg15[%c0_91, %c0_92] : memref<1x8xf32, #tpu.memory_space<vmem>>, vector<1x8xf32>
    %249 = vector.broadcast %248 : vector<1x8xf32> to vector<2x8xf32>
    %250 = arith.addf %247, %249 : vector<2x8xf32>
    %c0_93 = arith.constant 0 : index
    %c0_94 = arith.constant 0 : index
    %251 = vector.load %arg16[%c0_93, %c0_94] : memref<2x8xf32, #tpu.memory_space<vmem>>, vector<2x8xf32>
    tpu.vector_store %arg16[%c0_93, %c0_94], %250 {strides = array<i32>} : memref<2x8xf32, #tpu.memory_space<vmem>>, vector<2x8xf32>,
    return
  }
}

</mosaic_0001>

<bundles_post_ra>
// kernel: model_forward.1
= control target key start
LH: loop header
LB: loop body
LE: loop exit
PB: predicated region body
PF: predicated region fallthrough
CT: control target
= control target key end

     0   :  { %s3537_s0 = inlined_call_operand.vmem [shape: f32[16,16], index: 0, kind: input, shape index: {}]   ;;  %s3538_s1 = inlined_call_operand.vmem [shape: f32[4,84], index: 1, kind: input, shape index: {}]   ;;  %s3539_s2 = inlined_call_operand.vmem [shape: f32[1,84], index: 2, kind: input, shape index: {}]   ;;  %s3540_s3 = inlined_call_operand.vmem [shape: f32[84,256], index: 3, kind: input, shape index: {}]   ;;  %s3541_s4 = inlined_call_operand.vmem [shape: f32[12,256], index: 4, kind: input, shape index: {}]   ;;  %s3542_s5 = inlined_call_operand.hbm [shape: f32[1,256], index: 5, kind: input, shape index: {}]   ;;  %s3543_s6 = inlined_call_operand.hbm [shape: f32[16,16], index: 6, kind: input, shape index: {}]   ;;  %s3544_s7 = inlined_call_operand.hbm [shape: f32[1,256], index: 7, kind: input, shape index: {}]   ;;  %s3545_s8 = inlined_call_operand.hbm [shape: f32[64,256], index: 8, kind: input, shape index: {}]   ;;  %s3546_s9 = inlined_call_operand.hbm [shape: f32[64,192], index: 9, kind: input, shape index: {}]   ;;  %s3547_s10 = inlined_call_operand.hbm [shape: f32[1,192], index: 10, kind: input, shape index: {}]   ;;  %s3548_s11 = inlined_call_operand.vmem [shape: f32[64,4], index: 11, kind: input, shape index: {}]   ;;  %s3549_s12 = inlined_call_operand.hbm [shape: f32[4,64], index: 12, kind: input, shape index: {}]   ;;  %s3550_s13 = inlined_call_operand.hbm [shape: f32[2,16], index: 13, kind: input, shape index: {}]   ;;  %s3551_s14 = inlined_call_operand.vmem [shape: f32[64,8], index: 14, kind: input, shape index: {}]   ;;  %s3552_s15 = inlined_call_operand.hbm [shape: f32[1,8], index: 15, kind: input, shape index: {}]   ;;  %s3553_s16 = inlined_call_operand.hbm [shape: f32[2,8], index: 16, kind: output, shape index: {}]  }
   0x1   :  { %3555 = sst [smem:[#allocation25_spill]] %s3537_s0 }
   0x2   :  { %21 = vsyncpa [#allocation4], 0 }
   0x3   :  { %22 = vsyncpa [#allocation7], 0 }
   0x4   :  { %23 = vsyncpa [#allocation10], 0 }
   0x5   :  { %24 = vsyncpa [#allocation13], 0 }
   0x6   :  { %25 = vsyncpa [#allocation16], 0 }
   0x7   :  { %26 = vsyncpa [#allocation5], 0  ;;  %s2932_s21 = smov [#allocation6]   ;;  %s2700_s25 = scalar_lea.hbm %s3543_s6, 256 }
   0x8   :  { %s52_s22 = sshll.u32 %s2932_s21, 4  ;;  %p2701_p0 = scmp.ne.s32.totalorder %s3543_s6, %s2700_s25  ;;  %s53_s22 = int_to_ptr.vmem [resolvable:$true] %s52_s22 }
   0x9   :  { %p2704_p1 = scmp.lt.u32.totalorder %s2700_s25, %s3543_s6 }
   0xb   :  { %p2706_p2 = pnand %p2704_p1, %p2701_p0 }
   0xd   :  { %2709 = shalt.err (!%p2706_p2)
}
   0xe   :  { %s2710_s30 = scalar_lea.vmem %s53_s22, 256  ;;  %p2715_p4 = scmp.lt.s32.totalorder %s53_s22, %s53_s22 }
   0xf   :  { %p2711_p3 = scmp.ne.s32.totalorder %s53_s22, %s2710_s30  ;;  %p2716_p5 = scmp.lt.s32.totalorder %s2710_s30, %s2710_s30 }
  0x11   :  { %p2717_p6 = por %p2716_p5, %p2715_p4 }
  0x13   :  { %p2718_p7 = pnand %p2717_p6, %p2711_p3 }
  0x15   :  { %2721 = shalt.err (!%p2718_p7)
}
  0x16   :  { %s2933_s0 = smov 128   ;;  %s2934_s17 = smov 8  }
  0x17   :  { %58 = dma.hbm_to_vmem [thread:$0]  %s3543_s6, 256, %s53_s22, [#allocation7], %s2933_s0, %s2933_s0, %s2934_s17  }
  0x18   :  { %s2935_s20 = smov [#allocation9]   ;;  %s2722_s25 = scalar_lea.hbm %s3545_s8, 2048 }
  0x19   :  { %s74_s21 = sshll.u32 %s2935_s20, 4  ;;  %p2723_p8 = scmp.ne.s32.totalorder %s3545_s8, %s2722_s25  ;;  %s75_s21 = int_to_ptr.vmem [resolvable:$true] %s74_s21 }
  0x1a   :  { %p2726_p9 = scmp.lt.u32.totalorder %s2722_s25, %s3545_s8 }
  0x1c   :  { %p2728_p10 = pnand %p2726_p9, %p2723_p8 }
  0x1e   :  { %2731 = shalt.err (!%p2728_p10)
}
  0x1f   :  { %s2732_s30 = scalar_lea.vmem %s75_s21, 2048  ;;  %p2737_p12 = scmp.lt.s32.totalorder %s75_s21, %s75_s21 }
  0x20   :  { %p2733_p11 = scmp.ne.s32.totalorder %s75_s21, %s2732_s30  ;;  %p2738_p13 = scmp.lt.s32.totalorder %s2732_s30, %s2732_s30 }
  0x22   :  { %p2739_p0 = por %p2738_p13, %p2737_p12 }
  0x24   :  { %p2740_p1 = pnand %p2739_p0, %p2733_p11 }
  0x26   :  { %2743 = shalt.err (!%p2740_p1)
}
  0x27   :  { %s2936_s6 = smov 256   ;;  %s2937_s22 = smov 16  }
  0x28   :  { %80 = dma.hbm_to_vmem [thread:$0]  %s3545_s8, 2048, %s75_s21, [#allocation10], %s2936_s6, %s2936_s6, %s2937_s22  }
  0x29   :  { %s2938_s18 = smov [#allocation12]   ;;  %s2939_s20 = smov [#allocation15]  }
  0x2a   :  { %s99_s19 = sshll.u32 %s2938_s18, 4  ;;  %s121_s23 = sshll.u32 %s2939_s20, 4  ;;  %s100_s19 = int_to_ptr.vmem [resolvable:$true] %s99_s19  ;;  %s122_s23 = int_to_ptr.vmem [resolvable:$true] %s121_s23 }
  0x2b   :  { %s2744_s26 = scalar_lea.hbm %s3547_s10, 32 }
  0x2c   :  { %p2745_p2 = scmp.ne.s32.totalorder %s3547_s10, %s2744_s26  ;;  %p2748_p3 = scmp.lt.u32.totalorder %s2744_s26, %s3547_s10 }
  0x2e   :  { %p2750_p4 = pnand %p2748_p3, %p2745_p2 }
  0x30   :  { %2753 = shalt.err (!%p2750_p4)
}
  0x31   :  { %s2754_s8 = scalar_lea.vmem %s100_s19, 32  ;;  %p2759_p6 = scmp.lt.s32.totalorder %s100_s19, %s100_s19 }
  0x32   :  { %p2755_p5 = scmp.ne.s32.totalorder %s100_s19, %s2754_s8  ;;  %p2760_p7 = scmp.lt.s32.totalorder %s2754_s8, %s2754_s8 }
  0x34   :  { %p2761_p8 = por %p2760_p7, %p2759_p6 }
  0x36   :  { %p2762_p9 = pnand %p2761_p8, %p2755_p5 }
  0x38   :  { %2765 = shalt.err (!%p2762_p9)
}
  0x39   :  { %102 = dma.hbm_to_vmem [thread:$0]  %s3547_s10, 32, %s100_s19, [#allocation13]  }
  0x3a   :  { %s2766_s20 = scalar_lea.hbm %s3550_s13, 32 }
  0x3b   :  { %p2767_p10 = scmp.ne.s32.totalorder %s3550_s13, %s2766_s20  ;;  %p2770_p11 = scmp.lt.u32.totalorder %s2766_s20, %s3550_s13 }
  0x3d   :  { %p2772_p12 = pnand %p2770_p11, %p2767_p10 }
  0x3f   :  { %2775 = shalt.err (!%p2772_p12)
}
  0x40   :  { %s2776_s28 = scalar_lea.vmem %s122_s23, 32  ;;  %p2781_p0 = scmp.lt.s32.totalorder %s122_s23, %s122_s23 }
  0x41   :  { %p2777_p13 = scmp.ne.s32.totalorder %s122_s23, %s2776_s28  ;;  %p2782_p1 = scmp.lt.s32.totalorder %s2776_s28, %s2776_s28 }
  0x43   :  { %p2783_p2 = por %p2782_p1, %p2781_p0 }
  0x45   :  { %p2784_p3 = pnand %p2783_p2, %p2777_p13 }
  0x47   :  { %2787 = shalt.err (!%p2784_p3)
}
  0x48   :  { %124 = dma.hbm_to_vmem [thread:$0]  %s3550_s13, 32, %s122_s23, [#allocation16]  }
  0x49   :  { %s2940_s29 = smov [#allocation3]   ;;  %s2941_s8 = smov [#allocation8]  }
  0x4a   :  { %s43_s30 = sshll.u32 %s2940_s29, 4  ;;  %s65_s21 = sshll.u32 %s2941_s8, 4  ;;  %s44_s30 = int_to_ptr.vmem [resolvable:$true] %s43_s30  ;;  %s66_s21 = int_to_ptr.vmem [resolvable:$true] %s65_s21 }
  0x4b   :  { %s2788_s18 = scalar_lea.hbm %s3542_s5, 32 }
  0x4c   :  { %p2789_p4 = scmp.ne.s32.totalorder %s3542_s5, %s2788_s18  ;;  %p2792_p5 = scmp.lt.u32.totalorder %s2788_s18, %s3542_s5 }
  0x4e   :  { %p2794_p6 = pnand %p2792_p5, %p2789_p4 }
  0x50   :  { %2797 = shalt.err (!%p2794_p6)
}
  0x51   :  { %s2798_s13 = scalar_lea.vmem %s44_s30, 32  ;;  %p2803_p8 = scmp.lt.s32.totalorder %s44_s30, %s44_s30 }
  0x52   :  { %p2799_p7 = scmp.ne.s32.totalorder %s44_s30, %s2798_s13  ;;  %p2804_p9 = scmp.lt.s32.totalorder %s2798_s13, %s2798_s13 }
  0x54   :  { %p2805_p10 = por %p2804_p9, %p2803_p8 }
  0x56   :  { %p2806_p11 = pnand %p2805_p10, %p2799_p7 }
  0x58   :  { %2809 = shalt.err (!%p2806_p11)
}
  0x59   :  { %46 = dma.hbm_to_vmem [thread:$0]  %s3542_s5, 32, %s44_s30, [#allocation4]  }
  0x5a   :  { %s2810_s19 = scalar_lea.hbm %s3544_s7, 32 }
  0x5b   :  { %p2811_p12 = scmp.ne.s32.totalorder %s3544_s7, %s2810_s19  ;;  %p2814_p13 = scmp.lt.u32.totalorder %s2810_s19, %s3544_s7 }
  0x5d   :  { %p2816_p0 = pnand %p2814_p13, %p2811_p12 }
  0x5f   :  { %2819 = shalt.err (!%p2816_p0)
}
  0x60   :  { %s2820_s18 = scalar_lea.vmem %s66_s21, 32  ;;  %p2825_p2 = scmp.lt.s32.totalorder %s66_s21, %s66_s21 }
  0x61   :  { %p2821_p1 = scmp.ne.s32.totalorder %s66_s21, %s2820_s18  ;;  %p2826_p3 = scmp.lt.s32.totalorder %s2820_s18, %s2820_s18 }
  0x63   :  { %p2827_p4 = por %p2826_p3, %p2825_p2 }
  0x65   :  { %p2828_p5 = pnand %p2827_p4, %p2821_p1 }
  0x67   :  { %2831 = shalt.err (!%p2828_p5)
}
  0x68   :  { %68 = dma.hbm_to_vmem [thread:$0]  %s3544_s7, 32, %s66_s21, [#allocation7]  }
  0x69   :  { %s2942_s20 = smov [#allocation11]   ;;  %s2943_s25 = smov [#allocation14]  }
  0x6a   :  { %s86_s24 = sshll.u32 %s2942_s20, 4  ;;  %s111_s26 = sshll.u32 %s2943_s25, 4  ;;  %s87_s24 = int_to_ptr.vmem [resolvable:$true] %s86_s24  ;;  %s112_s26 = int_to_ptr.vmem [resolvable:$true] %s111_s26 }
  0x6b   :  { %s2832_s27 = scalar_lea.hbm %s3546_s9, 2048 }
  0x6c   :  { %p2833_p6 = scmp.ne.s32.totalorder %s3546_s9, %s2832_s27  ;;  %p2836_p7 = scmp.lt.u32.totalorder %s2832_s27, %s3546_s9 }
  0x6e   :  { %p2838_p8 = pnand %p2836_p7, %p2833_p6 }
  0x70   :  { %2841 = shalt.err (!%p2838_p8)
}
  0x71   :  { %s2842_s7 = scalar_lea.vmem %s87_s24, 2048  ;;  %p2847_p10 = scmp.lt.s32.totalorder %s87_s24, %s87_s24 }
  0x72   :  { %p2843_p9 = scmp.ne.s32.totalorder %s87_s24, %s2842_s7  ;;  %p2848_p11 = scmp.lt.s32.totalorder %s2842_s7, %s2842_s7 }
  0x74   :  { %p2849_p12 = por %p2848_p11, %p2847_p10 }
  0x76   :  { %p2850_p13 = pnand %p2849_p12, %p2843_p9 }
  0x78   :  { %2853 = shalt.err (!%p2850_p13)
}
  0x79   :  { %92 = dma.hbm_to_vmem [thread:$0]  %s3546_s9, 2048, %s87_s24, [#allocation10], %s2936_s6, %s2936_s6, %s2937_s22  }
  0x7a   :  { %s2854_s18 = scalar_lea.hbm %s3549_s12, 64 }
  0x7b   :  { %p2855_p0 = scmp.ne.s32.totalorder %s3549_s12, %s2854_s18  ;;  %p2858_p1 = scmp.lt.u32.totalorder %s2854_s18, %s3549_s12 }
  0x7d   :  { %p2860_p2 = pnand %p2858_p1, %p2855_p0 }
  0x7f   :  { %2863 = shalt.err (!%p2860_p2)
}
  0x80   :  { %s2864_s13 = scalar_lea.vmem %s112_s26, 64  ;;  %p2869_p4 = scmp.lt.s32.totalorder %s112_s26, %s112_s26 }
  0x81   :  { %p2865_p3 = scmp.ne.s32.totalorder %s112_s26, %s2864_s13  ;;  %p2870_p5 = scmp.lt.s32.totalorder %s2864_s13, %s2864_s13 }
  0x83   :  { %p2871_p6 = por %p2870_p5, %p2869_p4 }
  0x85   :  { %p2872_p7 = pnand %p2871_p6, %p2865_p3 }
  0x87   :  { %2875 = shalt.err (!%p2872_p7)
}
  0x88   :  { %114 = dma.hbm_to_vmem [thread:$0]  %s3549_s12, 64, %s112_s26, [#allocation13]  }
  0x89   :  { %s2944_s22 = smov [#allocation17]   ;;  %s2876_s28 = scalar_lea.hbm %s3552_s15, 16 }
  0x8a   :  { %s133_s24 = sshll.u32 %s2944_s22, 4  ;;  %p2877_p8 = scmp.ne.s32.totalorder %s3552_s15, %s2876_s28  ;;  %s134_s24 = int_to_ptr.vmem [resolvable:$true] %s133_s24 }
  0x8b   :  { %p2880_p9 = scmp.lt.u32.totalorder %s2876_s28, %s3552_s15 }
  0x8d   :  { %p2882_p10 = pnand %p2880_p9, %p2877_p8 }
  0x8f   :  { %2885 = shalt.err (!%p2882_p10)
}
  0x90   :  { %s2886_s21 = scalar_lea.vmem %s134_s24, 16  ;;  %s2890_s12 = scalar_lea.vmem %s134_s24, 32 }
  0x91   :  { %p2887_p11 = scmp.ne.s32.totalorder %s134_s24, %s2886_s21  ;;  %p2891_p12 = scmp.lt.s32.totalorder %s134_s24, %s134_s24 }
  0x92   :  { %p2892_p13 = scmp.lt.s32.totalorder %s2890_s12, %s2886_s21 }
  0x94   :  { %p2893_p0 = por %p2892_p13, %p2891_p12 }
  0x96   :  { %p2894_p1 = pnand %p2893_p0, %p2887_p11 }
  0x98   :  { %2897 = shalt.err (!%p2894_p1)
}
  0x99   :  { %136 = dma.hbm_to_vmem [thread:$0]  %s3552_s15, 16, %s134_s24, [#allocation16]  }
  0x9a   :  { %2920 = dma.done.wait [#allocation4], 32  }
  0x9b   :  { %2921 = vsyncadd [#allocation4], 4294967264 }
  0x9c   :  { %2922 = dma.done.wait [#allocation7], 288  }
  0x9d   :  { %2923 = vsyncadd [#allocation7], 4294967008 }
  0x9e   :  { %2924 = dma.done.wait [#allocation10], 4096  }
  0x9f   :  { %2925 = vsyncadd [#allocation10], 4294963200 }
  0xa0   :  { %2926 = dma.done.wait [#allocation13], 96  }
  0xa1   :  { %2927 = vsyncadd [#allocation13], 4294967200 }
  0xa2   :  { %2928 = dma.done.wait [#allocation16], 48  }
  0xa3   :  { %2929 = vsyncadd [#allocation16], 4294967248  ;;  %v2945_v0 = vmov 0.0   ;;  %vm178_vm0 = vcmask 1043456   ;;  %v170_v1 = vld [vmem:[%s3538_s1] sm:$0xf] }
  0xa4   :  { %688 = vmatprep.mubr.f32.mxu0 %v2945_v0  ;;  %s3556_s5 = sld [smem:[#allocation25_spill]]  ;;  %2295 = vmatprep.subr.msk.mxu1 %vm178_vm0, %v170_v1  ;;  %s2946_s25 = smov 124   ;;  %v291_v6 = vld [vmem:[%s3541_s4 + $0x8] sm:$0xff]  ;;  %v293_v7 = vld [vmem:[%s3541_s4 + $0x18] sm:$0xf]  ;;  %vm2947_vm1 = vmmov 1  }
  0xa5   :  { %vm3169_vm2 = vmpackc.low %vm178_vm0, %vm2947_vm1  ;;  %2296 = vmatpush3.msk.msra.mxu1 %vm178_vm0, %v170_v1  ;;  %v2362_v9 = vpack.c.bf16 %v293_v7, %v291_v6  ;;  %v290_v10 = vld [vmem:[%s3541_s4] sm:$0xff]  ;;  %v292_v11 = vld [vmem:[%s3541_s4 + $0x10] sm:$0xf]  ;;  %vm171_vm3 = vcmask 31744   ;;  %vm300_vm4 = vcmask 97280   ;;  %vm388_vm5 = vcmask 687104  }
  0xa6   :  { %v269_v14 = vld [vmem:[%s3540_s3 + $0x8] sm:$0xff]  ;;  %v271_v15 = vld [vmem:[%s3540_s3 + $0x18] sm:$0xff]  ;;  %v2365_v18 = vpack.c.bf16 %v292_v11, %v290_v10  ;;  %v268_v20 = vld [vmem:[%s3540_s3] sm:$0xff]  ;;  %vm496_vm8 = vcmask 130048   ;;  %vm727_vm9 = vcmask 254976   ;;  %vm729_vm10 = vcmask 517376  }
  0xa7   :  { %2364 = vmatprep.subr.msk.bf16.mxu1 %vm3169_vm2, %v2362_v9  ;;  %v2368_v19 = vpack.c.bf16 %v271_v15, %v269_v14  ;;  %v270_v21 = vld [vmem:[%s3540_s3 + $0x10] sm:$0xff]  ;;  %v273_v22 = vld [vmem:[%s3540_s3 + $0x28] sm:$0xff]  ;;  %v275_v23 = vld [vmem:[%s3540_s3 + $0x38] sm:$0xff]  ;;  %vm620_vm11 = vcmask 523264   ;;  %vm846_vm12 = vcmask 257026   ;;  %vm848_vm13 = vcmask 519426  }
  0xa8   :  { %v2370_v24 = vpack.c.bf16 %v270_v21, %v268_v20  ;;  %v2372_v25 = vpack.c.bf16 %v275_v23, %v273_v22  ;;  %v272_v26 = vld [vmem:[%s3540_s3 + $0x20] sm:$0xff]  ;;  %v274_v27 = vld [vmem:[%s3540_s3 + $0x30] sm:$0xff]  ;;  %v277_v29 = vld [vmem:[%s3540_s3 + $0x48] sm:$0xff]  ;;  %vm966_vm14 = vcmask 259076   ;;  %vm968_vm15 = vcmask 521476   ;;  %s2951_s22 = smov [#allocation18]  }
  0xa9   :  { %v279_v30 = vld [vmem:[%s3540_s3 + $0x58] sm:$0xff]  ;;  %v2374_v31 = vpack.c.bf16 %v274_v27, %v272_v26  ;;  %v276_v33 = vld [vmem:[%s3540_s3 + $0x40] sm:$0xff]  ;;  %v278_v34 = vld [vmem:[%s3540_s3 + $0x50] sm:$0xff]  ;;  %vm1086_vm1 = vcmask 261126   ;;  %s2199_s24 = sshll.u32 %s2951_s22, 4  ;;  %s2200_s24 = int_to_ptr.vmem [resolvable:$true] %s2199_s24 }
  0xaa   :  { %v164_v2 = vld [vmem:[%s3556_s5] sm:$0xff]  ;;  %v165_v3 = vld [vmem:[%s3556_s5 + $0x8] sm:$0xff]  ;;  %v2376_v32 = vpack.c.bf16 %v279_v30, %v277_v29  ;;  %v283_v36 = vld [vmem:[%s3540_s3 + $0x78] sm:$0xff]  ;;  %v2378_v38 = vpack.c.bf16 %v278_v34, %v276_v33  ;;  %p2903_p3 = scmp.lt.s32.totalorder %s2200_s24, %s2200_s24 }
  0xab   :  { %v2574_v4 = vtrunc.f32 %v164_v2  ;;  %v2576_v5 = vtrunc.f32 %v165_v3  ;;  %296 = vrot.lane.b32.xlu0 %v164_v2, %s2946_s25  ;;  %v281_v35 = vld [vmem:[%s3540_s3 + $0x68] sm:$0xff]  ;;  %v280_v40 = vld [vmem:[%s3540_s3 + $0x60] sm:$0xff]  ;;  %v282_v41 = vld [vmem:[%s3540_s3 + $0x70] sm:$0xff] }
  0xac   :  { %v2380_v39 = vpack.c.bf16 %v283_v36, %v281_v35  ;;  %v285_v42 = vld [vmem:[%s3540_s3 + $0x88] sm:$0xff]  ;;  %v287_v43 = vld [vmem:[%s3540_s3 + $0x98] sm:$0xff]  ;;  %v2382_v44 = vpack.c.bf16 %v282_v41, %v280_v40  ;;  %v284_v46 = vld [vmem:[%s3540_s3 + $0x80] sm:$0xff] }
  0xad   :  { %v2575_v12 = vcvt.f32.s32 %v2574_v4  ;;  %v2577_v13 = vcvt.f32.s32 %v2576_v5  ;;  %v2384_v45 = vpack.c.bf16 %v287_v43, %v285_v42  ;;  %v286_v47 = vld [vmem:[%s3540_s3 + $0x90] sm:$0xff]  ;;  %v289_v49 = vld [vmem:[%s3540_s3 + $0xa8] sm:$0xf]  ;;  %v288_v50 = vld [vmem:[%s3540_s3 + $0xa0] sm:$0xf] }
  0xae   :  { %v2386_v48 = vpack.c.bf16 %v286_v47, %v284_v46  ;;  %v2215_v51 = vld [vmem:[%s3539_s2] ss:$0 sm:$0xff]  ;;  %v605_v56 = vld [vmem:[#allocation9 + $0x8] sm:$0xff]  ;;  %v604_v59 = vld [vmem:[#allocation9] sm:$0xff]  ;;  %s2948_s2 = smov 64  }
  0xaf   :  { %v168_v16 = vcvt.s32.f32 %v2575_v12  ;;  %v169_v17 = vcvt.s32.f32 %v2577_v13  ;;  %298 = vrot.lane.b32.xlu0 %v165_v3, %s2946_s25  ;;  %v607_v57 = vld [vmem:[#allocation9 + $0x18] sm:$0xff]  ;;  %v606_v60 = vld [vmem:[#allocation9 + $0x10] sm:$0xff]  ;;  %v609_v62 = vld [vmem:[#allocation9 + $0x28] sm:$0xff] }
  0xb0   :  { %v3266_v58 = vpack.c.bf16 %v607_v57, %v605_v56  ;;  %v3268_v61 = vpack.c.bf16 %v606_v60, %v604_v59  ;;  %v611_v63 = vld [vmem:[#allocation9 + $0x38] sm:$0xff]  ;;  %v608_v2 = vld [vmem:[#allocation9 + $0x20] sm:$0xff]  ;;  %v610_v3 = vld [vmem:[#allocation9 + $0x30] sm:$0xff] }
  0xb1   :  { %2297 = vmatprep.mubr.msk.f32.mxu1 %vm171_vm3, %v168_v16  ;;  %v3272_v1 = vpack.c.bf16 %v611_v63, %v609_v62  ;;  %v3274_v4 = vpack.c.bf16 %v610_v3, %v608_v2  ;;  %v613_v5 = vld [vmem:[#allocation9 + $0x48] sm:$0xff]  ;;  %v615_v6 = vld [vmem:[#allocation9 + $0x58] sm:$0xff]  ;;  %v612_v8 = vld [vmem:[#allocation9 + $0x40] sm:$0xff] }
  0xb2   :  { %2298 = vmatmul.mubr.msk.f32.vlgmr.msra.gmra.mrb[0].mxu1 %vm171_vm3, %v169_v17  ;;  %2393 = vmatprep.subr.bf16.mxu0 %v3266_v58  ;;  %v3278_v7 = vpack.c.bf16 %v615_v6, %v613_v5  ;;  %v614_v9 = vld [vmem:[#allocation9 + $0x50] sm:$0xff]  ;;  %v617_v11 = vld [vmem:[#allocation9 + $0x68] sm:$0xff]  ;;  %v619_v12 = vld [vmem:[#allocation9 + $0x78] sm:$0xff]  ;;  %v480_v17 = vlaneseq }
  0xb3   :  { %2367 = vmatpush1.bf16.msk.msra.mxu1 %vm3169_vm2, %v2365_v18  ;;  %375 = vmatprep.mubr.f32.mxu1 %v2945_v0  ;;  %v3280_v10 = vpack.c.bf16 %v614_v9, %v612_v8  ;;  %v3284_v13 = vpack.c.bf16 %v619_v12, %v617_v11  ;;  %v616_v14 = vld [vmem:[#allocation9 + $0x60] sm:$0xff]  ;;  %v618_v15 = vld [vmem:[#allocation9 + $0x70] sm:$0xff]  ;;  %v478_v20 = vld [vmem:[#allocation3] sm:$0x3]  ;;  %vm1088_vm2 = vcmask 523526  }
  0xb4   :  { %2369 = vmatprep.subr.bf16.mxu1 %v2368_v19  ;;  %2395 = vmatpush1.bf16.msra.mxu0 %v3268_v61  ;;  %v3286_v16 = vpack.c.bf16 %v618_v15, %v616_v14  ;;  %v481_v18 = vshrl.u32 %v480_v17, 7  ;;  %v494_v34 = vld [vmem:[#allocation6] sm:$0xff]  ;;  %v495_v35 = vld [vmem:[#allocation6 + $0x8] sm:$0xff] }
  0xb5   :  { %2397 = vmatprep.subr.bf16.mxu0 %v3272_v1 }
  0xb6   :  { %v3301_v19 = vsub.s32 1, %v481_v18  ;;  %v3303_v21 = vsub.s32 0, %v481_v18 }
  0xb8   :  { %2399 = vmatpush1.bf16.msra.mxu0 %v3274_v4 }
  0xb9   :  { %2401 = vmatprep.subr.bf16.mxu0 %v3278_v7 }
  0xbc   :  { %2403 = vmatpush1.bf16.msra.mxu0 %v3280_v10 }
  0xbd   :  { %2405 = vmatprep.subr.bf16.mxu0 %v3284_v13 }
  0xc0   :  { %2407 = vmatpush1.bf16.msra.mxu0 %v3286_v16 }
  0xc1   :  { %2409 = vmatprep.subr.bf16.mxu0 %v3266_v58 }
  0xc3   :  { %689 = vmatmul.mubr.f32.vlgmr.msra.gmra.mrb[0].mxu0 %v2945_v0 }
  0xc4   :  { %2411 = vmatpush1.bf16.msra.mxu0 %v3268_v61  ;;  %798 = vmatprep.mubr.f32.mxu0 %v2945_v0 }
  0xc5   :  { %2413 = vmatprep.subr.bf16.mxu0 %v3272_v1 }
  0xc8   :  { %2415 = vmatpush1.bf16.msra.mxu0 %v3274_v4 }
  0xc9   :  { %2417 = vmatprep.subr.bf16.mxu0 %v3278_v7 }
  0xcc   :  { %2419 = vmatpush1.bf16.msra.mxu0 %v3280_v10 }
  0xcd   :  { %2421 = vmatprep.subr.bf16.mxu0 %v3284_v13 }
  0xd0   :  { %2423 = vmatpush1.bf16.msra.mxu0 %v3286_v16 }
  0xd1   :  { %2441 = vmatprep.subr.bf16.mxu0 %v3266_v58 }
 0x11d   :  { %v297_v28 = vpop.permute.xlu0 %296 }
 0x11e   :  { %2218 = vmatmul.mubr.msk.f32.vlgmr.msra.gmra.mrb[2].mxu1 %vm300_vm4, %v297_v28 }
 0x11f   :  { %2371 = vmatpush1.bf16.msra.mxu1 %v2370_v24  ;;  %381 = vmatprep.mubr.f32.mxu1 %v2945_v0  ;;  %v487_v24 = vrot.slane %v478_v20, %v3301_v19 }
 0x120   :  { %2373 = vmatprep.subr.bf16.mxu1 %v2372_v25  ;;  %v483_v25 = vrot.slane %v478_v20, %v3303_v21 }
 0x121   :  { %v299_v37 = vpop.permute.xlu0 %298 }
 0x122   :  { %2219 = vmatmul.mubr.msk.f32.gmra.mrb[4].mxu1 %vm300_vm4, %v299_v37  ;;  %vm1675_vm4 = vcmask 1041408  }
 0x123   :  { %2375 = vmatpush1.bf16.msra.mxu1 %v2374_v31  ;;  %465 = vmatprep.mubr.f32.mxu1 %v2945_v0 }
 0x124   :  { %2377 = vmatprep.subr.bf16.mxu1 %v2376_v32 }
 0x127   :  { %2379 = vmatpush1.bf16.msra.mxu1 %v2378_v38  ;;  %v580_v38 = vld [vmem:[#allocation8] sm:$0x3] }
 0x128   :  { %2381 = vmatprep.subr.bf16.mxu1 %v2380_v39  ;;  %v589_v39 = vrot.slane %v580_v38, %v3303_v21  ;;  %v593_v41 = vrot.slane %v580_v38, %v3301_v19 }
 0x12b   :  { %2383 = vmatpush1.bf16.msra.mxu1 %v2382_v44 }
 0x12c   :  { %2385 = vmatprep.subr.bf16.mxu1 %v2384_v45 }
 0x12f   :  { %2387 = vmatpush1.bf16.msra.mxu1 %v2386_v48 }
 0x130   :  { %2220 = vmatprep.subr.msk.mxu1 %vm178_vm0, %v289_v49 }
 0x133   :  { %2221 = vmatpush1.msk.msra.mxu1 %vm178_vm0, %v288_v50 }
 0x185   :  { %v2299_v52 = vpop.f32.mrb[0].mxu1 }
 0x186   :  { %v248_v53 = vpop.f32.mrb[1].mxu1  ;;  %vm265_vm7 = vcmp.eq.f32.partialorder %v2299_v52, %v2215_v51 }
 0x187   :  { %vm264_vm6 = vcmp.eq.f32.partialorder %v248_v53, %v2215_v51  ;;  %v267_v55 = vsel %vm265_vm7, 1.0, %v2945_v0 }
 0x188   :  { %v266_v54 = vsel %vm264_vm6, 1.0, %v2945_v0  ;;  %vm2950_vm6 = vmmov 0  }
 0x189   :  { %2222 = vmatmul.mubr.msk.f32.vlgmr.msra.gmra.mrb[2].mxu1 %vm388_vm5, %v266_v54 }
 0x18a   :  { %471 = vmatprep.mubr.f32.mxu1 %v2945_v0 }
 0x18d   :  { %2223 = vmatmul.mubr.msk.f32.gmra.mrb[4].mxu1 %vm388_vm5, %v267_v55  ;;  %vm1678_vm5 = vcmask 1045504  }
 0x18e   :  { %567 = vmatprep.mubr.f32.mxu1 %v2945_v0 }
 0x196   :  { %v690_v36 = vpop.f32.mrb[0].mxu0 }
 0x197   :  { %v692_v37 = vpop.f32.mrb[1].mxu0 }
 0x25c   :  { %v467_v22 = vpop.f32.mrb[2].mxu1 }
 0x25d   :  { %v469_v23 = vpop.f32.mrb[3].mxu1  ;;  %v490_v31 = vadd.f32 %v483_v25, %v467_v22 }
 0x25e   :  { %v491_v29 = vadd.f32 %v487_v24, %v469_v23 }
 0x260   :  { %v473_v26 = vpop.f32.mrb[4].mxu1 }
 0x261   :  { %v492_v27 = vadd.f32 %v483_v25, %v473_v26  ;;  %v475_v28 = vpop.f32.mrb[5].mxu1 }
 0x262   :  { %v493_v30 = vadd.f32 %v487_v24, %v475_v28 }
 0x263   :  { %v2390_v33 = vpack.c.bf16 %v492_v27, %v490_v31 }
 0x264   :  { %v2388_v32 = vpack.c.bf16 %v493_v30, %v491_v29 }
 0x266   :  { %2389 = vmatprep.subr.bf16.mxu1 %v2388_v32 }
 0x267   :  { %2391 = vmatpush1.bf16.msra.mxu1 %v2390_v33 }
 0x268   :  { %2425 = vmatprep.subr.bf16.mxu1 %v3266_v58 }
 0x26a   :  { %2224 = vmatmul.mubr.msk.f32.vlgmr.msra.gmra.mrb[6].mxu1 %vm496_vm8, %v494_v34 }
 0x26b   :  { %573 = vmatprep.mubr.f32.mxu1 %v2945_v0  ;;  %2427 = vmatpush1.bf16.msra.mxu1 %v3268_v61 }
 0x26c   :  { %2429 = vmatprep.subr.bf16.mxu1 %v3272_v1 }
 0x26e   :  { %2225 = vmatmul.mubr.msk.f32.gmra.mrb[8].mxu1 %vm496_vm8, %v495_v35 }
 0x26f   :  { %2431 = vmatpush1.bf16.msra.mxu1 %v3274_v4  ;;  %918 = vmatprep.mubr.f32.mxu1 %v2945_v0 }
 0x270   :  { %2433 = vmatprep.subr.bf16.mxu1 %v3278_v7 }
 0x273   :  { %2435 = vmatpush1.bf16.msra.mxu1 %v3280_v10 }
 0x274   :  { %2437 = vmatprep.subr.bf16.mxu1 %v3284_v13 }
 0x277   :  { %2439 = vmatpush1.bf16.msra.mxu1 %v3286_v16 }
 0x278   :  { %2457 = vmatprep.subr.bf16.mxu1 %v3266_v58 }
 0x33d   :  { %v569_v40 = vpop.f32.mrb[6].mxu1 }
 0x33e   :  { %v581_v42 = vsub.f32 %v490_v31, %v569_v40  ;;  %v571_v43 = vpop.f32.mrb[7].mxu1 }
 0x33f   :  { %v582_v44 = vsub.f32 %v491_v29, %v571_v43 }
 0x340   :  { %v596_v45 = vmul.f32 %v589_v39, %v581_v42 }
 0x341   :  { %v597_v46 = vmul.f32 %v593_v41, %v582_v44  ;;  %v575_v47 = vpop.f32.mrb[8].mxu1 }
 0x342   :  { %v3322_v48 = vadd.f32 %v596_v45, %v569_v40  ;;  %v583_v49 = vsub.f32 %v492_v27, %v575_v47  ;;  %v577_v50 = vpop.f32.mrb[9].mxu1 }
 0x343   :  { %v3324_v51 = vadd.f32 %v597_v46, %v571_v43  ;;  %v584_v52 = vsub.f32 %v493_v30, %v577_v50 }
 0x344   :  { %v598_v53 = vmul.f32 %v589_v39, %v583_v49  ;;  %v695_v60 = vadd.f32 %v690_v36, %v3322_v48 }
 0x345   :  { %v599_v54 = vmul.f32 %v593_v41, %v584_v52  ;;  %v696_v55 = vadd.f32 %v692_v37, %v3324_v51 }
 0x346   :  { %v3327_v56 = vadd.f32 %v598_v53, %v575_v47  ;;  %v2226_v62 = vmul.f32 -1.442695, %v695_v60 }
 0x347   :  { %v3329_v57 = vadd.f32 %v599_v54, %v577_v50  ;;  %2598 = vtanh.f32 %v696_v55  ;;  %v2227_v14 = vmul.f32 -1.442695, %v696_v55 }
 0x348   :  { %2600 = vpow2.f32 %v2226_v62 }
 0x351   :  { %v2599_v59 = vpop.eup %2598 }
 0x352   :  { %712 = vrot.lane.b32.xlu1 %v2599_v59, %s2948_s2  ;;  %v2601_v63 = vpop.eup %2600 }
 0x353   :  { %v703_v2 = vadd.f32 1.0, %v2601_v63 }
 0x355   :  { %2602 = vrcp.f32 %v703_v2 }
 0x35f   :  { %v2603_v3 = vpop.eup %2602 }
 0x360   :  { %v710_v8 = vmul.f32 0.0, %v2603_v3 }
 0x3c4   :  { %v713_v5 = vpop.permute.xlu1 %712 }
 0x3c5   :  { %v715_v6 = vmul.f32 %v2603_v3, %v713_v5 }
 0x3c7   :  { %717 = vrot.lane.b32.xlu1 %v715_v6, %s2948_s2 }
 0x439   :  { %v718_v9 = vpop.permute.xlu1 %717 }
 0x43a   :  { %v720_v11 = vadd.f32 %v718_v9, %v710_v8 }
 0x43c   :  { %2604 = vtanh.f32 %v720_v11  ;;  %v827_v36 = vrot.slane %v720_v11, 6 }
 0x43d   :  { %2606 = vpow2.f32 %v2227_v14 }
 0x446   :  { %v2605_v12 = vpop.eup %2604 }
 0x447   :  { %723 = vrot.lane.b32.xlu0 %v2605_v12, %s2948_s2  ;;  %v2607_v15 = vpop.eup %2606 }
 0x448   :  { %v704_v17 = vadd.f32 1.0, %v2607_v15 }
 0x44a   :  { %2608 = vrcp.f32 %v704_v17 }
 0x454   :  { %v2609_v18 = vpop.eup %2608 }
 0x4b9   :  { %v724_v20 = vpop.permute.xlu0 %723 }
 0x4ba   :  { %v726_v22 = vmul.f32 %v2609_v18, %v724_v20 }
 0x4bc   :  { %728 = vst.msk [vmem:[#allocation2] sm:$0x3] %vm727_vm9, %v726_v22  ;;  %2228 = vmatmul.mubr.msk.f32.vlgmr.msra.gmra.mrb[2].mxu0 %vm620_vm11, %v726_v22 }
 0x4bd   :  { %730 = vst.msk [vmem:[#allocation2 + $0xe] sm:$0x3] %vm729_vm10, %v726_v22  ;;  %2443 = vmatpush1.bf16.msra.mxu0 %v3268_v61  ;;  %1038 = vmatprep.mubr.f32.mxu0 %v2945_v0 }
 0x4be   :  { %2445 = vmatprep.subr.bf16.mxu0 %v3272_v1 }
 0x4c1   :  { %2447 = vmatpush1.bf16.msra.mxu0 %v3274_v4 }
 0x4c2   :  { %2449 = vmatprep.subr.bf16.mxu0 %v3278_v7 }
 0x4c5   :  { %2451 = vmatpush1.bf16.msra.mxu0 %v3280_v10 }
 0x4c6   :  { %2453 = vmatprep.subr.bf16.mxu0 %v3284_v13 }
 0x4c9   :  { %2455 = vmatpush1.bf16.msra.mxu0 %v3286_v16 }
 0x4ca   :  { %2473 = vmatprep.subr.bf16.mxu0 %v3266_v58 }
 0x58f   :  { %v800_v23 = vpop.f32.mrb[2].mxu0 }
 0x590   :  { %v802_v24 = vpop.f32.mrb[3].mxu0  ;;  %v807_v28 = vrot.slane %v800_v23, 6 }
 0x591   :  { %v808_v25 = vrot.slane %v802_v24, 6 }
 0x592   :  { %v811_v29 = vadd.f32 %v807_v28, %v3322_v48 }
 0x593   :  { %v812_v26 = vadd.f32 %v808_v25, %v3324_v51 }
 0x594   :  { %v2229_v30 = vmul.f32 -1.442695, %v811_v29 }
 0x595   :  { %2610 = vtanh.f32 %v812_v26  ;;  %v2230_v41 = vmul.f32 -1.442695, %v812_v26 }
 0x596   :  { %2612 = vpow2.f32 %v2229_v30 }
 0x59f   :  { %v2611_v27 = vpop.eup %2610 }
 0x5a0   :  { %831 = vrot.lane.b32.xlu1 %v2611_v27, %s2948_s2  ;;  %v2613_v31 = vpop.eup %2612 }
 0x5a1   :  { %v819_v32 = vadd.f32 1.0, %v2613_v31 }
 0x5a3   :  { %2614 = vrcp.f32 %v819_v32 }
 0x5ad   :  { %v2615_v33 = vpop.eup %2614 }
 0x5ae   :  { %v829_v37 = vmul.f32 %v2615_v33, %v827_v36 }
 0x612   :  { %v832_v34 = vpop.permute.xlu1 %831 }
 0x613   :  { %v834_v35 = vmul.f32 %v2615_v33, %v832_v34 }
 0x615   :  { %836 = vrot.lane.b32.xlu0 %v834_v35, %s2948_s2 }
 0x687   :  { %v837_v38 = vpop.permute.xlu0 %836 }
 0x688   :  { %v839_v39 = vadd.f32 %v837_v38, %v829_v37 }
 0x68a   :  { %2616 = vtanh.f32 %v839_v39  ;;  %v947_v6 = vrot.slane %v839_v39, 6 }
 0x68b   :  { %2618 = vpow2.f32 %v2230_v41 }
 0x694   :  { %v2617_v40 = vpop.eup %2616 }
 0x695   :  { %842 = vrot.lane.b32.xlu1 %v2617_v40, %s2948_s2  ;;  %v2619_v42 = vpop.eup %2618 }
 0x696   :  { %v820_v43 = vadd.f32 1.0, %v2619_v42 }
 0x698   :  { %2620 = vrcp.f32 %v820_v43 }
 0x6a2   :  { %v2621_v44 = vpop.eup %2620 }
 0x707   :  { %v843_v45 = vpop.permute.xlu1 %842 }
 0x708   :  { %v845_v46 = vmul.f32 %v2621_v44, %v843_v45 }
 0x70a   :  { %847 = vst.msk [vmem:[#allocation2] sm:$0xc] %vm846_vm12, %v845_v46  ;;  %v851_v47 = vrot.slane %v845_v46, 2 }
 0x70b   :  { %849 = vst.msk [vmem:[#allocation2 + $0xa] sm:$0xc] %vm848_vm13, %v845_v46 }
 0x70c   :  { %2231 = vmatmul.mubr.msk.f32.vlgmr.msra.gmra.mrb[10].mxu1 %vm620_vm11, %v851_v47 }
 0x70d   :  { %2459 = vmatpush1.bf16.msra.mxu1 %v3268_v61  ;;  %1158 = vmatprep.mubr.f32.mxu1 %v2945_v0 }
 0x70e   :  { %2461 = vmatprep.subr.bf16.mxu1 %v3272_v1 }
 0x711   :  { %2463 = vmatpush1.bf16.msra.mxu1 %v3274_v4 }
 0x712   :  { %2465 = vmatprep.subr.bf16.mxu1 %v3278_v7 }
 0x715   :  { %2467 = vmatpush1.bf16.msra.mxu1 %v3280_v10 }
 0x716   :  { %2469 = vmatprep.subr.bf16.mxu1 %v3284_v13 }
 0x719   :  { %2471 = vmatpush1.bf16.msra.mxu1 %v3286_v16 }
 0x71a   :  { %2489 = vmatprep.subr.bf16.mxu1 %v3266_v58 }
 0x7df   :  { %v920_v49 = vpop.f32.mrb[10].mxu1 }
 0x7e0   :  { %v922_v50 = vpop.f32.mrb[11].mxu1  ;;  %v927_v55 = vrot.slane %v920_v49, 4 }
 0x7e1   :  { %v928_v52 = vrot.slane %v922_v50, 4 }
 0x7e2   :  { %v931_v59 = vadd.f32 %v927_v55, %v3322_v48 }
 0x7e3   :  { %v932_v53 = vadd.f32 %v928_v52, %v3324_v51 }
 0x7e4   :  { %v2232_v60 = vmul.f32 -1.442695, %v931_v59 }
 0x7e5   :  { %2622 = vtanh.f32 %v932_v53  ;;  %v2233_v14 = vmul.f32 -1.442695, %v932_v53 }
 0x7e6   :  { %2624 = vpow2.f32 %v2232_v60 }
 0x7ef   :  { %v2623_v54 = vpop.eup %2622 }
 0x7f0   :  { %951 = vrot.lane.b32.xlu0 %v2623_v54, %s2948_s2  ;;  %v2625_v62 = vpop.eup %2624 }
 0x7f1   :  { %v939_v63 = vadd.f32 1.0, %v2625_v62 }
 0x7f3   :  { %2626 = vrcp.f32 %v939_v63 }
 0x7fd   :  { %v2627_v2 = vpop.eup %2626 }
 0x7fe   :  { %v949_v8 = vmul.f32 %v2627_v2, %v947_v6 }
 0x862   :  { %v952_v3 = vpop.permute.xlu0 %951 }
 0x863   :  { %v954_v5 = vmul.f32 %v2627_v2, %v952_v3 }
 0x865   :  { %956 = vrot.lane.b32.xlu1 %v954_v5, %s2948_s2 }
 0x8d7   :  { %v957_v9 = vpop.permute.xlu1 %956 }
 0x8d8   :  { %v959_v11 = vadd.f32 %v957_v9, %v949_v8 }
 0x8da   :  { %2628 = vtanh.f32 %v959_v11  ;;  %v1067_v36 = vrot.slane %v959_v11, 6 }
 0x8db   :  { %2630 = vpow2.f32 %v2233_v14 }
 0x8e4   :  { %v2629_v12 = vpop.eup %2628 }
 0x8e5   :  { %962 = vrot.lane.b32.xlu0 %v2629_v12, %s2948_s2  ;;  %v2631_v15 = vpop.eup %2630 }
 0x8e6   :  { %v940_v17 = vadd.f32 1.0, %v2631_v15 }
 0x8e8   :  { %2632 = vrcp.f32 %v940_v17 }
 0x8f2   :  { %v2633_v18 = vpop.eup %2632 }
 0x957   :  { %v963_v20 = vpop.permute.xlu0 %962 }
 0x958   :  { %v965_v22 = vmul.f32 %v2633_v18, %v963_v20 }
 0x95a   :  { %967 = vst.msk [vmem:[#allocation2] sm:$0x30] %vm966_vm14, %v965_v22  ;;  %v971_v23 = vrot.slane %v965_v22, 4 }
 0x95b   :  { %969 = vst.msk [vmem:[#allocation2 + $0x6] sm:$0x30] %vm968_vm15, %v965_v22 }
 0x95c   :  { %2234 = vmatmul.mubr.msk.f32.vlgmr.msra.gmra.mrb[4].mxu0 %vm620_vm11, %v971_v23 }
 0x95d   :  { %2475 = vmatpush1.bf16.msra.mxu0 %v3268_v61  ;;  %1269 = vmatprep.mubr.f32.mxu0 %v2945_v0 }
 0x95e   :  { %2477 = vmatprep.subr.bf16.mxu0 %v3272_v1 }
 0x961   :  { %2479 = vmatpush1.bf16.msra.mxu0 %v3274_v4 }
 0x962   :  { %2481 = vmatprep.subr.bf16.mxu0 %v3278_v7 }
 0x965   :  { %2483 = vmatpush1.bf16.msra.mxu0 %v3280_v10 }
 0x966   :  { %2485 = vmatprep.subr.bf16.mxu0 %v3284_v13 }
 0x969   :  { %2487 = vmatpush1.bf16.msra.mxu0 %v3286_v16 }
 0x96a   :  { %2505 = vmatprep.subr.bf16.mxu0 %v3266_v58 }
 0xa2f   :  { %v1040_v24 = vpop.f32.mrb[4].mxu0 }
 0xa30   :  { %v1042_v25 = vpop.f32.mrb[5].mxu0  ;;  %v1047_v29 = vrot.slane %v1040_v24, 2 }
 0xa31   :  { %v1048_v26 = vrot.slane %v1042_v25, 2 }
 0xa32   :  { %v1051_v30 = vadd.f32 %v1047_v29, %v3322_v48 }
 0xa33   :  { %v1052_v27 = vadd.f32 %v1048_v26, %v3324_v51 }
 0xa34   :  { %v2235_v31 = vmul.f32 -1.442695, %v1051_v30 }
 0xa35   :  { %2634 = vtanh.f32 %v1052_v27  ;;  %v2236_v40 = vmul.f32 -1.442695, %v1052_v27 }
 0xa36   :  { %2636 = vpow2.f32 %v2235_v31 }
 0xa3f   :  { %v2635_v28 = vpop.eup %2634 }
 0xa40   :  { %1071 = vrot.lane.b32.xlu1 %v2635_v28, %s2948_s2  ;;  %v2637_v32 = vpop.eup %2636 }
 0xa41   :  { %v1059_v33 = vadd.f32 1.0, %v2637_v32 }
 0xa43   :  { %2638 = vrcp.f32 %v1059_v33 }
 0xa4d   :  { %v2639_v34 = vpop.eup %2638 }
 0xa4e   :  { %v1069_v37 = vmul.f32 %v2639_v34, %v1067_v36 }
 0xab2   :  { %v1072_v35 = vpop.permute.xlu1 %1071 }
 0xab3   :  { %v1074_v58 = vmul.f32 %v2639_v34, %v1072_v35 }
 0xab5   :  { %1076 = vrot.lane.b32.xlu0 %v1074_v58, %s2948_s2 }
 0xb27   :  { %v1077_v51 = vpop.permute.xlu0 %1076 }
 0xb28   :  { %v1079_v38 = vadd.f32 %v1077_v51, %v1069_v37 }
 0xb2a   :  { %2640 = vtanh.f32 %v1079_v38  ;;  %v1181_v63 = vrot.slane %v1079_v38, 6 }
 0xb2b   :  { %2642 = vpow2.f32 %v2236_v40 }
 0xb34   :  { %v2641_v39 = vpop.eup %2640 }
 0xb35   :  { %1082 = vrot.lane.b32.xlu1 %v2641_v39, %s2948_s2  ;;  %v2643_v48 = vpop.eup %2642 }
 0xb36   :  { %v1060_v41 = vadd.f32 1.0, %v2643_v48 }
 0xb38   :  { %2644 = vrcp.f32 %v1060_v41 }
 0xb42   :  { %v2645_v42 = vpop.eup %2644 }
 0xba7   :  { %v1083_v43 = vpop.permute.xlu1 %1082 }
 0xba8   :  { %v1085_v44 = vmul.f32 %v2645_v42, %v1083_v43 }
 0xbaa   :  { %1087 = vst.msk [vmem:[#allocation2] sm:$0xc0] %vm1086_vm1, %v1085_v44  ;;  %v1091_v45 = vrot.slane %v1085_v44, 6 }
 0xbab   :  { %1089 = vst.msk [vmem:[#allocation2 + $0x2] sm:$0xc0] %vm1088_vm2, %v1085_v44 }
 0xbac   :  { %2237 = vmatmul.mubr.msk.f32.vlgmr.msra.gmra.mrb[12].mxu1 %vm620_vm11, %v1091_v45 }
 0xbad   :  { %2491 = vmatpush1.bf16.msra.mxu1 %v3268_v61  ;;  %1387 = vmatprep.mubr.f32.mxu1 %v2945_v0 }
 0xbae   :  { %2493 = vmatprep.subr.bf16.mxu1 %v3272_v1 }
 0xbb1   :  { %2495 = vmatpush1.bf16.msra.mxu1 %v3274_v4 }
 0xbb2   :  { %2497 = vmatprep.subr.bf16.mxu1 %v3278_v7 }
 0xbb5   :  { %2499 = vmatpush1.bf16.msra.mxu1 %v3280_v10 }
 0xbb6   :  { %2501 = vmatprep.subr.bf16.mxu1 %v3284_v13 }
 0xbb9   :  { %2503 = vmatpush1.bf16.msra.mxu1 %v3286_v16 }
 0xc7f   :  { %v1160_v46 = vpop.f32.mrb[12].mxu1 }
 0xc80   :  { %v1162_v47 = vpop.f32.mrb[13].mxu1  ;;  %v1165_v52 = vadd.f32 %v1160_v46, %v3327_v56 }
 0xc81   :  { %v1166_v49 = vadd.f32 %v1162_v47, %v3329_v57 }
 0xc82   :  { %v2238_v53 = vmul.f32 -1.442695, %v1165_v52 }
 0xc83   :  { %2646 = vtanh.f32 %v1166_v49  ;;  %v2239_v8 = vmul.f32 -1.442695, %v1166_v49 }
 0xc84   :  { %2648 = vpow2.f32 %v2238_v53 }
 0xc8d   :  { %v2647_v50 = vpop.eup %2646 }
 0xc8e   :  { %1185 = vrot.lane.b32.xlu0 %v2647_v50, %s2948_s2  ;;  %v2649_v54 = vpop.eup %2648 }
 0xc8f   :  { %v1173_v55 = vadd.f32 1.0, %v2649_v54 }
 0xc91   :  { %2650 = vrcp.f32 %v1173_v55 }
 0xc9b   :  { %v2651_v59 = vpop.eup %2650 }
 0xc9c   :  { %v1183_v2 = vmul.f32 %v2651_v59, %v1181_v63 }
 0xd00   :  { %v1186_v60 = vpop.permute.xlu0 %1185 }
 0xd01   :  { %v1188_v62 = vmul.f32 %v2651_v59, %v1186_v60 }
 0xd03   :  { %1190 = vrot.lane.b32.xlu1 %v1188_v62, %s2948_s2 }
 0xd75   :  { %v1191_v3 = vpop.permute.xlu1 %1190 }
 0xd76   :  { %v1193_v5 = vadd.f32 %v1191_v3, %v1183_v2 }
 0xd78   :  { %2652 = vtanh.f32 %v1193_v5  ;;  %v1298_v25 = vrot.slane %v1193_v5, 6 }
 0xd79   :  { %2654 = vpow2.f32 %v2239_v8 }
 0xd82   :  { %v2653_v6 = vpop.eup %2652 }
 0xd83   :  { %1196 = vrot.lane.b32.xlu0 %v2653_v6, %s2948_s2  ;;  %v2655_v9 = vpop.eup %2654 }
 0xd84   :  { %v1174_v11 = vadd.f32 1.0, %v2655_v9 }
 0xd86   :  { %2656 = vrcp.f32 %v1174_v11 }
 0xd90   :  { %v2657_v12 = vpop.eup %2656 }
 0xdf5   :  { %v1197_v14 = vpop.permute.xlu0 %1196 }
 0xdf6   :  { %v1199_v15 = vmul.f32 %v2657_v12, %v1197_v14 }
 0xdf8   :  { %1200 = vst.msk [vmem:[#allocation2 + $0x8] sm:$0x3] %vm727_vm9, %v1199_v15  ;;  %2240 = vmatmul.mubr.msk.f32.vlgmr.msra.gmra.mrb[6].mxu0 %vm620_vm11, %v1199_v15 }
 0xdf9   :  { %1201 = vst.msk [vmem:[#allocation2 + $0x6] sm:$0x3] %vm729_vm10, %v1199_v15  ;;  %2507 = vmatpush1.bf16.msra.mxu0 %v3268_v61  ;;  %1505 = vmatprep.mubr.f32.mxu0 %v2945_v0 }
 0xdfa   :  { %2509 = vmatprep.subr.bf16.mxu0 %v3272_v1 }
 0xdfd   :  { %2511 = vmatpush1.bf16.msra.mxu0 %v3274_v4 }
 0xdfe   :  { %2513 = vmatprep.subr.bf16.mxu0 %v3278_v7 }
 0xe01   :  { %2515 = vmatpush1.bf16.msra.mxu0 %v3280_v10 }
 0xe02   :  { %2517 = vmatprep.subr.bf16.mxu0 %v3284_v13 }
 0xe05   :  { %2519 = vmatpush1.bf16.msra.mxu0 %v3286_v16 }
 0xecb   :  { %v1271_v17 = vpop.f32.mrb[6].mxu0 }
 0xecc   :  { %v1273_v18 = vpop.f32.mrb[7].mxu0  ;;  %v1278_v1 = vrot.slane %v1271_v17, 6 }
 0xecd   :  { %v1279_v20 = vrot.slane %v1273_v18, 6 }
 0xece   :  { %v1282_v4 = vadd.f32 %v1278_v1, %v3327_v56  ;;  %v1560_v1 = vld [vmem:[#allocation11 + $0x18] sm:$0xff] }
 0xecf   :  { %v1283_v22 = vadd.f32 %v1279_v20, %v3329_v57 }
 0xed0   :  { %v2241_v23 = vmul.f32 -1.442695, %v1282_v4 }
 0xed1   :  { %2658 = vtanh.f32 %v1283_v22  ;;  %v2242_v30 = vmul.f32 -1.442695, %v1283_v22 }
 0xed2   :  { %2660 = vpow2.f32 %v2241_v23  ;;  %v1559_v23 = vld [vmem:[#allocation11 + $0x10] sm:$0xff] }
 0xedb   :  { %v2659_v61 = vpop.eup %2658 }
 0xedc   :  { %1302 = vrot.lane.b32.xlu1 %v2659_v61, %s2948_s2  ;;  %v2661_v7 = vpop.eup %2660  ;;  %v1558_v61 = vld [vmem:[#allocation11 + $0x8] sm:$0xff] }
 0xedd   :  { %v1290_v10 = vadd.f32 1.0, %v2661_v7  ;;  %v2520_v4 = vpack.c.bf16 %v1560_v1, %v1558_v61  ;;  %v1562_v7 = vld [vmem:[#allocation11 + $0x28] sm:$0xff] }
 0xedf   :  { %2662 = vrcp.f32 %v1290_v10  ;;  %v1564_v10 = vld [vmem:[#allocation11 + $0x38] sm:$0xff]  ;;  %2521 = vmatprep.subr.bf16.mxu1 %v2520_v4 }
 0xee9   :  { %v2663_v13 = vpop.eup %2662 }
 0xeea   :  { %v1300_v26 = vmul.f32 %v2663_v13, %v1298_v25 }
 0xf4e   :  { %v1303_v24 = vpop.permute.xlu1 %1302 }
 0xf4f   :  { %v1305_v16 = vmul.f32 %v2663_v13, %v1303_v24  ;;  %v2524_v24 = vpack.c.bf16 %v1564_v10, %v1562_v7 }
 0xf51   :  { %1307 = vrot.lane.b32.xlu0 %v1305_v16, %s2948_s2  ;;  %v1563_v16 = vld [vmem:[#allocation11 + $0x30] sm:$0xff] }
 0xfc3   :  { %v1308_v27 = vpop.permute.xlu0 %1307 }
 0xfc4   :  { %v1310_v28 = vadd.f32 %v1308_v27, %v1300_v26 }
 0xfc6   :  { %2664 = vtanh.f32 %v1310_v28  ;;  %v1416_v47 = vrot.slane %v1310_v28, 6 }
 0xfc7   :  { %2666 = vpow2.f32 %v2242_v30  ;;  %v1568_v30 = vld [vmem:[#allocation11 + $0x58] sm:$0xff] }
 0xfd0   :  { %v2665_v29 = vpop.eup %2664 }
 0xfd1   :  { %1313 = vrot.lane.b32.xlu1 %v2665_v29, %s2948_s2  ;;  %v2667_v31 = vpop.eup %2666  ;;  %v1566_v29 = vld [vmem:[#allocation11 + $0x48] sm:$0xff] }
 0xfd2   :  { %v1291_v32 = vadd.f32 1.0, %v2667_v31 }
 0xfd4   :  { %2668 = vrcp.f32 %v1291_v32  ;;  %v2528_v32 = vpack.c.bf16 %v1568_v30, %v1566_v29 }
 0xfde   :  { %v2669_v33 = vpop.eup %2668 }
0x1043   :  { %v1314_v34 = vpop.permute.xlu1 %1313 }
0x1044   :  { %v1316_v35 = vmul.f32 %v2669_v33, %v1314_v34  ;;  %v1565_v33 = vld [vmem:[#allocation11 + $0x40] sm:$0xff]  ;;  %v1567_v34 = vld [vmem:[#allocation11 + $0x50] sm:$0xff] }
0x1046   :  { %1317 = vst.msk [vmem:[#allocation2 + $0x8] sm:$0xc] %vm846_vm12, %v1316_v35  ;;  %v1320_v58 = vrot.slane %v1316_v35, 2 }
0x1047   :  { %1318 = vst.msk [vmem:[#allocation2 + $0x2] sm:$0xc] %vm848_vm13, %v1316_v35  ;;  %v2530_v35 = vpack.c.bf16 %v1567_v34, %v1565_v33 }
0x1048   :  { %2243 = vmatmul.mubr.msk.f32.vlgmr.msra.gmra.mrb[14].mxu1 %vm620_vm11, %v1320_v58  ;;  %v1570_v58 = vld [vmem:[#allocation11 + $0x68] sm:$0xff] }
0x1049   :  { %1655 = vmatprep.mubr.f32.mxu1 %v2945_v0 }
0x111b   :  { %v1389_v36 = vpop.f32.mrb[14].mxu1 }
0x111c   :  { %v1391_v37 = vpop.f32.mrb[15].mxu1  ;;  %v1396_v40 = vrot.slane %v1389_v36, 4  ;;  %v1572_v36 = vld [vmem:[#allocation11 + $0x78] sm:$0xff] }
0x111d   :  { %v1397_v51 = vrot.slane %v1391_v37, 4  ;;  %v1569_v37 = vld [vmem:[#allocation11 + $0x60] sm:$0xff] }
0x111e   :  { %v1400_v48 = vadd.f32 %v1396_v40, %v3327_v56 }
0x111f   :  { %v1401_v38 = vadd.f32 %v1397_v51, %v3329_v57  ;;  %v2532_v51 = vpack.c.bf16 %v1572_v36, %v1570_v58 }
0x1120   :  { %v2244_v41 = vmul.f32 -1.442695, %v1400_v48 }
0x1121   :  { %2670 = vtanh.f32 %v1401_v38  ;;  %v2245_v54 = vmul.f32 -1.442695, %v1401_v38  ;;  %v1571_v38 = vld [vmem:[#allocation11 + $0x70] sm:$0xff] }
0x1122   :  { %2672 = vpow2.f32 %v2244_v41 }
0x112b   :  { %v2671_v39 = vpop.eup %2670 }
0x112c   :  { %1420 = vrot.lane.b32.xlu0 %v2671_v39, %s2948_s2  ;;  %v2673_v42 = vpop.eup %2672  ;;  %v2534_v39 = vpack.c.bf16 %v1571_v38, %v1569_v37 }
0x112d   :  { %v1408_v43 = vadd.f32 1.0, %v2673_v42 }
0x112f   :  { %2674 = vrcp.f32 %v1408_v43 }
0x1139   :  { %v2675_v44 = vpop.eup %2674 }
0x113a   :  { %v1418_v49 = vmul.f32 %v2675_v44, %v1416_v47 }
0x119e   :  { %v1421_v45 = vpop.permute.xlu0 %1420 }
0x119f   :  { %v1423_v46 = vmul.f32 %v2675_v44, %v1421_v45 }
0x11a1   :  { %1425 = vrot.lane.b32.xlu1 %v1423_v46, %s2948_s2 }
0x1213   :  { %v1426_v50 = vpop.permute.xlu1 %1425 }
0x1214   :  { %v1428_v52 = vadd.f32 %v1426_v50, %v1418_v49  ;;  %v1689_v49 = vld [vmem:[%s3548_s11] sm:$0xff]  ;;  %v1690_v50 = vld [vmem:[%s3548_s11 + $0x8] sm:$0xff] }
0x1216   :  { %2676 = vtanh.f32 %v1428_v52  ;;  %v1534_v26 = vrot.slane %v1428_v52, 6  ;;  %v1691_v52 = vld [vmem:[%s3548_s11 + $0x10] sm:$0xff] }
0x1217   :  { %2678 = vpow2.f32 %v2245_v54  ;;  %v1692_v54 = vld [vmem:[%s3548_s11 + $0x18] sm:$0xff] }
0x1220   :  { %v2677_v53 = vpop.eup %2676 }
0x1221   :  { %1431 = vrot.lane.b32.xlu0 %v2677_v53, %s2948_s2  ;;  %v2679_v55 = vpop.eup %2678  ;;  %v2536_v53 = vpack.c.bf16 %v1690_v50, %v1689_v49 }
0x1222   :  { %v1409_v59 = vadd.f32 1.0, %v2679_v55  ;;  %v2540_v55 = vpack.c.bf16 %v1692_v54, %v1691_v52  ;;  %v2106_v54 = vld [vmem:[%s3551_s14 + $0x18] sm:$0xff] }
0x1223   :  { %2537 = vmatprep.subr.bf16.mxu0 %v2536_v53 }
0x1224   :  { %2680 = vrcp.f32 %v1409_v59  ;;  %v1693_v59 = vld [vmem:[%s3548_s11 + $0x20] sm:$0xff] }
0x122e   :  { %v2681_v60 = vpop.eup %2680 }
0x1293   :  { %v1432_v62 = vpop.permute.xlu0 %1431 }
0x1294   :  { %v1434_v63 = vmul.f32 %v2681_v60, %v1432_v62  ;;  %v1694_v60 = vld [vmem:[%s3548_s11 + $0x28] sm:$0xff] }
0x1295   :  { %v2544_v62 = vpack.c.bf16 %v1694_v60, %v1693_v59  ;;  %v2107_v59 = vld [vmem:[%s3551_s14 + $0x20] sm:$0xff]  ;;  %v2108_v60 = vld [vmem:[%s3551_s14 + $0x28] sm:$0xff] }
0x1296   :  { %1435 = vst.msk [vmem:[#allocation2 + $0x8] sm:$0x30] %vm966_vm14, %v1434_v63  ;;  %v1438_v2 = vrot.slane %v1434_v63, 4 }
0x1297   :  { %1436 = vst.msk [vmem:[#allocation2 - $0x2] sm:$0x30] %vm968_vm15, %v1434_v63  ;;  %v1695_v63 = vld [vmem:[%s3548_s11 + $0x30] sm:$0xff] }
0x1298   :  { %2246 = vmatmul.mubr.msk.f32.vlgmr.msra.gmra.mrb[8].mxu0 %vm620_vm11, %v1438_v2  ;;  %v1696_v2 = vld [vmem:[%s3548_s11 + $0x38] sm:$0xff] }
0x1299   :  { %2539 = vmatpush3.bf16.msra.mxu0 %v2536_v53 }
0x129a   :  { %2541 = vmatprep.subr.bf16.mxu0 %v2540_v55 }
0x129d   :  { %2543 = vmatpush3.bf16.msra.mxu0 %v2540_v55 }
0x129e   :  { %2545 = vmatprep.subr.bf16.mxu0 %v2544_v62 }
0x12a1   :  { %2547 = vmatpush3.bf16.msra.mxu0 %v2544_v62  ;;  %v2109_v62 = vld [vmem:[%s3551_s14 + $0x30] sm:$0xff] }
0x136b   :  { %v1507_v3 = vpop.f32.mrb[8].mxu0 }
0x136c   :  { %v1509_v5 = vpop.f32.mrb[9].mxu0  ;;  %v1514_v11 = vrot.slane %v1507_v3, 2  ;;  %v2548_v3 = vpack.c.bf16 %v1696_v2, %v1695_v63  ;;  %v2110_v63 = vld [vmem:[%s3551_s14 + $0x38] sm:$0xff] }
0x136d   :  { %v1515_v6 = vrot.slane %v1509_v5, 2  ;;  %v3464_v5 = vld [vmem:[#allocation12] sm:$0x3]  ;;  %v2568_v2 = vpack.c.bf16 %v2110_v63, %v2109_v62 }
0x136e   :  { %v1518_v12 = vadd.f32 %v1514_v11, %v3327_v56  ;;  %v1561_v56 = vld [vmem:[#allocation11 + $0x20] sm:$0xff]  ;;  %2549 = vmatprep.subr.bf16.mxu0 %v2548_v3 }
0x136f   :  { %v1519_v8 = vadd.f32 %v1515_v6, %v3329_v57  ;;  %v1557_v57 = vld [vmem:[#allocation11] sm:$0xff]  ;;  %v2526_v25 = vpack.c.bf16 %v1563_v16, %v1561_v56  ;;  %2551 = vmatpush3.bf16.msra.mxu0 %v2548_v3  ;;  %v1578_v6 = vrot.slane %v3464_v5, %v3303_v21  ;;  %v2949_v16 = vmov 0.0|0.0  }
0x1370   :  { %v2247_v14 = vmul.f32 -1.442695, %v1518_v12  ;;  %v2522_v13 = vpack.c.bf16 %v1559_v23, %v1557_v57  ;;  %v1871_v56 = vld [vmem:[#allocation14] sm:$0xf] }
0x1371   :  { %2682 = vtanh.f32 %v1519_v8  ;;  %v2248_v48 = vmul.f32 -1.442695, %v1519_v8  ;;  %2331 = vmatprep.subr.msk.mxu0 %vm178_vm0, %v1871_v56 }
0x1372   :  { %2684 = vpow2.f32 %v2247_v14  ;;  %2523 = vmatpush1.bf16.msra.mxu1 %v2522_v13 }
0x1373   :  { %2525 = vmatprep.subr.bf16.mxu1 %v2524_v24 }
0x1376   :  { %2527 = vmatpush1.bf16.msra.mxu1 %v2526_v25 }
0x1377   :  { %2529 = vmatprep.subr.bf16.mxu1 %v2528_v32 }
0x137a   :  { %2531 = vmatpush1.bf16.msra.mxu1 %v2530_v35 }
0x137b   :  { %v2683_v9 = vpop.eup %2682  ;;  %2533 = vmatprep.subr.bf16.mxu1 %v2532_v51 }
0x137c   :  { %1538 = vrot.lane.b32.xlu1 %v2683_v9, %s2948_s2  ;;  %v2685_v15 = vpop.eup %2684 }
0x137d   :  { %v1526_v17 = vadd.f32 1.0, %v2685_v15 }
0x137e   :  { %2535 = vmatpush1.bf16.msra.mxu1 %v2534_v39  ;;  %v1797_v39 = vld [vmem:[#allocation15] sm:$0x3] }
0x137f   :  { %2686 = vrcp.f32 %v1526_v17  ;;  %2552 = vmatprep.subr.bf16.mxu1 %v2949_v16 }
0x1389   :  { %v2687_v18 = vpop.eup %2686 }
0x138a   :  { %v1536_v27 = vmul.f32 %v2687_v18, %v1534_v26 }
0x13ee   :  { %v1539_v20 = vpop.permute.xlu1 %1538 }
0x13ef   :  { %v1541_v22 = vmul.f32 %v2687_v18, %v1539_v20 }
0x13f1   :  { %1543 = vrot.lane.b32.xlu0 %v1541_v22, %s2948_s2 }
0x1463   :  { %v1544_v28 = vpop.permute.xlu0 %1543 }
0x1464   :  { %v1546_v31 = vadd.f32 %v1544_v28, %v1536_v27 }
0x1466   :  { %2688 = vtanh.f32 %v1546_v31 }
0x1467   :  { %2690 = vpow2.f32 %v2248_v48  ;;  %v2104_v48 = vld [vmem:[%s3551_s14 + $0x8] sm:$0xff] }
0x1470   :  { %v2689_v40 = vpop.eup %2688 }
0x1471   :  { %1549 = vrot.lane.b32.xlu1 %v2689_v40, %s2948_s2  ;;  %v2691_v41 = vpop.eup %2690  ;;  %v2103_v40 = vld [vmem:[%s3551_s14] sm:$0xff] }
0x1472   :  { %v1527_v42 = vadd.f32 1.0, %v2691_v41  ;;  %v2559_v41 = vpack.c.bf16 %v2104_v48, %v2103_v40 }
0x1474   :  { %2692 = vrcp.f32 %v1527_v42  ;;  %v1582_v42 = vrot.slane %v3464_v5, %v3301_v19  ;;  %v2105_v19 = vld [vmem:[%s3551_s14 + $0x10] sm:$0xff]  ;;  %s2898_s14 = scalar_lea.vmem %s2200_s24, 32 }
0x1475   :  { %v2562_v55 = vpack.c.bf16 %v2106_v54, %v2105_v19  ;;  %p2899_p2 = scmp.ne.s32.totalorder %s2200_s24, %s2898_s14  ;;  %p2904_p4 = scmp.lt.s32.totalorder %s2898_s14, %s2898_s14 }
0x1477   :  { %p2905_p5 = por %p2904_p4, %p2903_p3 }
0x1479   :  { %p2906_p6 = pnand %p2905_p5, %p2899_p2 }
0x147e   :  { %v2693_v43 = vpop.eup %2692 }
0x14e3   :  { %v1550_v44 = vpop.permute.xlu1 %1549 }
0x14e4   :  { %v1552_v45 = vmul.f32 %v2693_v43, %v1550_v44 }
0x14e6   :  { %1553 = vst.msk [vmem:[#allocation2 + $0x8] sm:$0xc0] %vm1086_vm1, %v1552_v45 }
0x14e7   :  { %1554 = vst.msk [vmem:[#allocation2 - $0x6] sm:$0xc0] %vm1088_vm2, %v1552_v45 }
0x14ed   :  { %v1556_v47 = vld [vmem:[#allocation2 + $0x8] sm:$0xff] }
0x14ee   :  { %v1555_v46 = vld [vmem:[#allocation2] sm:$0xff] }
0x14ef   :  { %2249 = vmatmul.mubr.msk.f32.vlgmr.msra.gmra.mrb[16].mxu1 %vm620_vm11, %v1555_v46 }
0x14f0   :  { %1661 = vmatprep.mubr.f32.mxu1 %v2945_v0 }
0x14f3   :  { %2250 = vmatmul.mubr.msk.f32.gmra.mrb[18].mxu1 %vm620_vm11, %v1556_v47 }
0x14f4   :  { %2323 = vmatprep.mubr.msk.f32.mxu1 %vm2950_vm6, %v2945_v0 }
0x15c2   :  { %v1657_v8 = vpop.f32.mrb[16].mxu1 }
0x15c3   :  { %v1658_v9 = vadd.f32 %v1657_v8, %v1578_v6  ;;  %v3468_v11 = vpop.f32.mrb[17].mxu1 }
0x15c4   :  { %v1660_v44 = vadd.f32 %v3468_v11, %v1582_v42 }
0x15c5   :  { %1681 = vrot.lane.b32.xlu0 %v1658_v9, %s2948_s2 }
0x15c6   :  { %v1663_v12 = vpop.f32.mrb[18].mxu1 }
0x15c7   :  { %v1664_v14 = vadd.f32 %v1663_v12, %v1578_v6  ;;  %v3471_v15 = vpop.f32.mrb[19].mxu1  ;;  %v2260_v12 = vld [vmem:[#allocation17] ss:$0 sm:$0xff] }
0x15c8   :  { %v1666_v43 = vadd.f32 %v3471_v15, %v1582_v42 }
0x15c9   :  { %1683 = vrot.lane.b32.xlu1 %v1664_v14, %s2948_s2  ;;  %v1669_v17 = vrot.slane %v1664_v14, 6  ;;  %v1671_v18 = vrot.slane %v1664_v14, 4  ;;  %v1673_v20 = vrot.slane %v1664_v14, 2 }
0x15cb   :  { %v1676_v22 = vsel %vm1675_vm4, %v1669_v17, %v1671_v18 }
0x15cc   :  { %v1677_v21 = vsel %vm178_vm0, %v1676_v22, %v1673_v20 }
0x15cd   :  { %v1679_v1 = vsel %vm1678_vm5, %v1677_v21, %v1664_v14 }
0x1637   :  { %v1682_v61 = vpop.permute.xlu0 %1681 }
0x1638   :  { %v1687_v57 = vmul.f32 %v1682_v61, %v1679_v1 }
0x163a   :  { %2316 = vmatprep.mubr.msk.f32.mxu0 %vm620_vm11, %v1687_v57 }
0x163b   :  { %v1684_v4 = vpop.permute.xlu1 %1683 }
0x163c   :  { %v1688_v23 = vmul.f32 %v1684_v4, %v1679_v1 }
0x163e   :  { %2317 = vmatmul.mubr.msk.f32.vlgmr.msra.gmra.mrb[10].mxu0 %vm620_vm11, %v1688_v23 }
0x163f   :  { %2332 = vmatpush3.msk.msra.mxu0 %vm178_vm0, %v1871_v56 }
0x1640   :  { %2558 = vmatprep.subr.bf16.mxu0 %v2949_v16 }
0x1711   :  { %v2318_v7 = vpop.f32.mrb[10].mxu0 }
0x1712   :  { %v1769_v10 = vpop.f32.mrb[11].mxu0  ;;  %v1781_v13 = vsel %vm171_vm3, %v2318_v7, -inf }
0x1713   :  { %1782 = vmax.xlane.f32.xlu1 %v1781_v13  ;;  %v1778_v24 = vsel %vm171_vm3, %v1769_v10, -inf }
0x1714   :  { %1779 = vmax.xlane.f32.xlu0 %v1778_v24 }
0x17a0   :  { %v1783_v25 = vpop.xlane.xlu1 %1782 }
0x17a1   :  { %v1780_v26 = vpop.xlane.xlu0 %1779 }
0x17a2   :  { %v1784_v27 = vmax.f32 %v1780_v26, %v1783_v25 }
0x17a4   :  { %v1785_v28 = vrot.slane %v1784_v27, 4 }
0x17a6   :  { %v1786_v29 = vmax.f32 %v1784_v27, %v1785_v28 }
0x17a8   :  { %v1787_v30 = vrot.slane %v1786_v29, 2 }
0x17aa   :  { %v1788_v31 = vmax.f32 %v1786_v29, %v1787_v30 }
0x17ac   :  { %v1789_v32 = vrot.slane %v1788_v31, 1 }
0x17ae   :  { %v1790_v33 = vmax.f32 %v1788_v31, %v1789_v32 }
0x17b0   :  { %v1791_v34 = vsub.f32 %v1769_v10, %v1790_v33  ;;  %v1792_v35 = vsub.f32 %v2318_v7, %v1790_v33 }
0x17b2   :  { %v1793_v58 = vmul.f32 1.442695, %v1791_v34  ;;  %v1795_v36 = vmul.f32 1.442695, %v1792_v35 }
0x17b4   :  { %2694 = vpow2.f32 %v1793_v58 }
0x17b5   :  { %2696 = vpow2.f32 %v1795_v36 }
0x17be   :  { %v2695_v37 = vpop.eup %2694 }
0x17bf   :  { %v2697_v51 = vpop.eup %2696  ;;  %2333 = vmatprep.mubr.msk.f32.mxu0 %vm171_vm3, %v2695_v37 }
0x17c0   :  { %2334 = vmatmul.mubr.msk.f32.vlgmr.msra.gmra.mrb[12].mxu0 %vm171_vm3, %v2697_v51  ;;  %v2553_v38 = vpack.c.bf16 %v2697_v51, %v2695_v37 }
0x17c1   :  { %2359 = vmatprep.mubr.msk.f32.mxu0 %vm2950_vm6, %v2945_v0  ;;  %2560 = vmatpush3.bf16.msra.mxu0 %v2559_v41 }
0x17c2   :  { %2554 = vmatpush3.bf16.msra.mxu1 %v2553_v38  ;;  %2561 = vmatprep.subr.bf16.mxu0 %v2949_v16 }
0x17c3   :  { %2326 = vmatprep.subr.mxu1 %v2945_v0 }
0x17c5   :  { %2324 = vmatmul.mubr.msk.f32.vlgmr.msra.gmra.mrb[20].mxu1 %vm496_vm8, %v1797_v39  ;;  %2563 = vmatpush3.bf16.msra.mxu0 %v2562_v55 }
0x17c6   :  { %2327 = vmatpush3.msk.msra.mxu1 %vm178_vm0, %v1871_v56  ;;  %2328 = vmatprep.mubr.msk.f32.mxu1 %vm2950_vm6, %v2945_v0  ;;  %vm2191_vm0 = vcmask 58368  }
0x17c7   :  { %2555 = vmatprep.subr.bf16.mxu1 %v2949_v16  ;;  %2564 = vmatprep.subr.bf16.mxu0 %v2949_v16 }
0x1893   :  { %v2335_v45 = vpop.f32.mrb[12].mxu0 }
0x1894   :  { %v2031_v46 = vmul.f32 %v2335_v45, %v1666_v43  ;;  %v2021_v47 = vpop.f32.mrb[13].mxu0 }
0x1895   :  { %v2030_v49 = vmul.f32 %v2021_v47, %v1660_v44 }
0x1897   :  { %v2556_v50 = vpack.c.bf16 %v2031_v46, %v2030_v49 }
0x1898   :  { %v1867_v52 = vpop.f32.mrb[20].mxu1 }
0x1899   :  { %2329 = vmatmul.mubr.msk.f32.vlgmr.msra.gmra.mrb[22].mxu1 %vm171_vm3, %v1867_v52  ;;  %v2325_v53 = vpop.f32.mrb[21].mxu1 }
0x189a   :  { %2557 = vmatpush3.bf16.msra.mxu1 %v2556_v50  ;;  %2340 = vmatprep.mubr.msk.f32.mxu1 %vm2950_vm6, %v2945_v0  ;;  %v2565_v0 = vpack.c.bf16 %v2108_v60, %v2107_v59 }
0x189c   :  { %2566 = vmatpush3.bf16.msra.mxu0 %v2565_v0 }
0x189d   :  { %2341 = vmatmul.mubr.msk.f32.vlgmr.msra.gmra.mrb[24].mxu1 %vm496_vm8, %v1797_v39  ;;  %2567 = vmatprep.subr.bf16.mxu0 %v2949_v16 }
0x18a0   :  { %2569 = vmatpush3.bf16.msra.mxu0 %v2568_v2 }
0x196c   :  { %v1944_v3 = vpop.f32.mrb[22].mxu1 }
0x196d   :  { %2698 = vrcp.f32 %v1944_v3  ;;  %v2330_v5 = vpop.f32.mrb[23].mxu1 }
0x1970   :  { %v2098_v6 = vpop.f32.mrb[24].mxu1 }
0x1971   :  { %v2342_v8 = vpop.f32.mrb[25].mxu1 }
0x1977   :  { %v2699_v9 = vpop.eup %2698 }
0x1978   :  { %v2102_v11 = vmul.f32 %v2699_v9, %v2098_v6 }
0x197a   :  { %2360 = vmatmul.mubr.msk.f32.vlgmr.msra.gmra.mrb[14].mxu0 %vm620_vm11, %v2102_v11 }
0x1a4d   :  { %v2187_v14 = vpop.f32.mrb[14].mxu0 }
0x1a4e   :  { %v2188_v15 = vadd.f32 %v2260_v12, %v2187_v14  ;;  %v2361_v17 = vpop.f32.mrb[15].mxu0 }
0x1a50   :  { %2192 = vst.msk [vmem:[#allocation18] sm:$0x3] %vm2191_vm0, %v2188_v15 }
0x1a51   :  { %2909 = shalt.err (!%p2906_p6)
}
0x1a52   :  { %s2910_s28 = scalar_lea.hbm %s3553_s16, 32 }
0x1a53   :  { %p2911_p7 = scmp.ne.s32.totalorder %s3553_s16, %s2910_s28  ;;  %p2914_p8 = scmp.lt.u32.totalorder %s2910_s28, %s3553_s16 }
0x1a55   :  { %p2916_p9 = pnand %p2914_p8, %p2911_p7 }
0x1a57   :  { %2919 = shalt.err (!%p2916_p9)
}
0x1a58   :  { %2202 = dma.vmem_to_hbm [thread:$0]  %s2200_s24, 32, %s3553_s16, [#allocation5]  }
0x1a59   :  { %2930 = dma.done.wait [#allocation5], 32  }
0x1a5a   :  { %2931 = vsyncadd [#allocation5], 4294967264 }
0x1a5b   :  { %2206 = vsyncpa [#allocation4], 1 }
0x1a5c   :  { %2207 = vsyncpa [#allocation7], 1 }
0x1a5d   :  { %2208 = vsyncpa [#allocation10], 1 }
0x1a5e   :  { %2209 = vsyncpa [#allocation13], 1 }
0x1a5f   :  { %2210 = vsyncpa [#allocation16], 1 }
0x1a60   :  { %2211 = vsyncpa [#allocation5], 1 }

</bundles_post_ra>
